<compile_context>
chip_gen: v7x
topology: tpu7x:2x2x1
jax: 0.10.0
libtpu: 0.0.40
codegen_flags: <defaults>
</compile_context>

<pallas_src>
import jax
import jax.numpy as jnp
from jax.experimental import pallas as pl
from jax.experimental.pallas import tpu as pltpu

LAYER_DIMS = [(784, 256), (256, 64), (64, 20), (20, 64), (64, 256), (256, 784)]
IN_DIM = 784
OUT_DIM = 784


def _auto_encoder_kernel(
    x_ref,
    w1_ref, b1_ref,
    w2_ref, b2_ref,
    w3_ref, b3_ref,
    w4_ref, b4_ref,
    w5_ref, b5_ref,
    w6_ref, b6_ref,
    o_ref,
):
    """Fused encoder+decoder MLP on one (TB, 784) batch tile."""
    compute_dtype = w1_ref.dtype  # bf16 MXU operand dtype

    def linear(h, w_ref, b_ref):
        # MXU matmul with f32 accumulation; bias add in f32 (v5e-safe VPU).
        acc = jnp.dot(h, w_ref[...], preferred_element_type=jnp.float32)
        return acc + b_ref[...]

    # In-kernel cast: x is streamed from HBM as f32, cast is a free VPU op.
    h = x_ref[...].astype(compute_dtype)

    # Encoder: Linear(784,256) ReLU, Linear(256,64) ReLU, Linear(64,20) ReLU
    h = jnp.maximum(linear(h, w1_ref, b1_ref), 0.0).astype(compute_dtype)
    h = jnp.maximum(linear(h, w2_ref, b2_ref), 0.0).astype(compute_dtype)
    h = jnp.maximum(linear(h, w3_ref, b3_ref), 0.0).astype(compute_dtype)

    # Decoder: Linear(20,64) ReLU, Linear(64,256) ReLU, Linear(256,784) Sigmoid
    h = jnp.maximum(linear(h, w4_ref, b4_ref), 0.0).astype(compute_dtype)
    h = jnp.maximum(linear(h, w5_ref, b5_ref), 0.0).astype(compute_dtype)

    # sigmoid(z) = 1 / (1 + exp(-z)): exp and approx reciprocal both on the EUP.
    z = linear(h, w6_ref, b6_ref)
    h = pl.reciprocal(1.0 + jnp.exp(-z), approx=True)

    o_ref[...] = h.astype(o_ref.dtype)


def init_params(key):
    """Deterministic f32 parameter init (shapes match the PyTorch module)."""
    params = []
    for fan_in, fan_out in LAYER_DIMS:
        kw, kb, key = jax.random.split(key, 3)
        bound = 1.0 / jnp.sqrt(fan_in)
        # Stored as (in, out) — equivalent to PyTorch weight.T
        w = jax.random.uniform(kw, (fan_in, fan_out), jnp.float32, -bound, bound)
        b = jax.random.uniform(kb, (1, fan_out), jnp.float32, -bound, bound)
        params.append((w, b))
    return params


def prepare_params(params, compute_dtype=jnp.bfloat16):
    """One-time cast outside the per-call path: bf16 weights, f32 biases."""
    flat = []
    for w, b in params:
        flat.append(jnp.asarray(w, compute_dtype))
        flat.append(jnp.asarray(b, jnp.float32).reshape(1, -1))
    return tuple(flat)


def _pick_batch_tile(batch, tb):
    tb = min(tb, batch)
    # Give the grid at least 2 steps when the batch allows it, so v7x's two
    # TensorCores both get work (no-op cost on single-TC v5e/v6e).
    if batch >= 16 and pl.cdiv(batch, tb) < 2:
        tb = (((batch + 1) // 2) + 7) // 8 * 8
    return tb


def auto_encoder_forward(x_nchw, flat_params, *, tb=512, out_dtype=jnp.bfloat16):
    """x_nchw: (B, 1, 28, 28) float32 -> (B, 1, 28, 28) out_dtype."""
    B = x_nchw.shape[0]
    x = x_nchw.reshape(B, IN_DIM)  # input.view(B, -1); stays f32 (cast in-kernel)

    tb_eff = _pick_batch_tile(B, tb)
    grid = (pl.cdiv(B, tb_eff),)

    x_spec = pl.BlockSpec((tb_eff, IN_DIM), lambda i: (i, 0))
    out_spec = pl.BlockSpec((tb_eff, OUT_DIM), lambda i: (i, 0))
    # Weights/biases: full-array blocks, constant index_map, single-buffered
    # (they never change across grid steps) -> loaded once, VMEM resident.
    param_specs = [
        pl.BlockSpec(p.shape, lambda i: (0, 0), pipeline_mode=pl.Buffered(1))
        for p in flat_params
    ]

    flops_per_sample = 2 * sum(fi * fo for fi, fo in LAYER_DIMS)
    out_itemsize = jnp.dtype(out_dtype).itemsize
    bytes_accessed = (
        B * IN_DIM * x.dtype.itemsize
        + B * OUT_DIM * out_itemsize
        + sum(int(p.size) * p.dtype.itemsize for p in flat_params)
    )
    cost = pl.CostEstimate(
        flops=B * flops_per_sample,
        transcendentals=2 * B * OUT_DIM,  # exp + reciprocal per output element
        bytes_accessed=bytes_accessed,
    )

    out = pl.pallas_call(
        _auto_encoder_kernel,
        out_shape=jax.ShapeDtypeStruct((B, OUT_DIM), out_dtype),
        grid=grid,
        in_specs=[x_spec] + param_specs,
        out_specs=out_spec,
        compiler_params=pltpu.CompilerParams(
            dimension_semantics=("parallel",),
            vmem_limit_bytes=32 << 20,
        ),
        cost_estimate=cost,
    )(x, *flat_params)

    return out.reshape(B, 1, 28, 28)  # output.view(B, 1, 28, 28)


def _reference_forward(x_nchw, params):
    """Plain-JAX f32 reference for sanity check."""
    B = x_nchw.shape[0]
    h = x_nchw.reshape(B, IN_DIM)
    acts = [jax.nn.relu] * 5 + [jax.nn.sigmoid]
    for (w, b), act in zip(params, acts):
        h = act(h @ w + b)
    return h.reshape(B, 1, 28, 28)


if __name__ == "__main__":
    key = jax.random.PRNGKey(0)
    k_in, k_in2, k_param = jax.random.split(key, 3)

    params = init_params(k_param)                 # f32 (PyTorch-equivalent)
    flat_params = prepare_params(params)          # one-time bf16 weight cast

    # Small batch, single grid step, f32 output path.
    B = 2
    x = jax.random.normal(k_in, (B, 1, 28, 28), jnp.float32)
    out = jax.block_until_ready(
        auto_encoder_forward(x, flat_params, out_dtype=jnp.float32))
    ref = _reference_forward(x, params)
    assert out.shape == (B, 1, 28, 28), out.shape
    assert jnp.allclose(out, ref, atol=3e-2, rtol=0.0), "mismatch vs reference (B=2)"

    # Multi-step grid (>=2 tiles) with a partial last block, bf16 output path.
    B2 = 20
    x2 = jax.random.normal(k_in2, (B2, 1, 28, 28), jnp.float32)
    out2 = jax.block_until_ready(auto_encoder_forward(x2, flat_params))
    ref2 = _reference_forward(x2, params)
    assert out2.shape == (B2, 1, 28, 28), out2.shape
    assert out2.dtype == jnp.bfloat16, out2.dtype
    assert jnp.allclose(out2.astype(jnp.float32), ref2, atol=3e-2, rtol=0.0), \
        "mismatch vs reference (B=20)"

    print("KERNEL_OK")
</pallas_src>

<mosaic_0001>
module attributes {stable_mosaic.version = 11 : i64} {
  func.func @_auto_encoder_kernel(%arg0: i32, %arg1: memref<2x784xf32, #tpu.memory_space<vmem>>, %arg2: memref<784x256xbf16, #tpu.memory_space<vmem>>, %arg3: memref<1x256xf32, #tpu.memory_space<vmem>>, %arg4: memref<256x64xbf16, #tpu.memory_space<vmem>>, %arg5: memref<1x64xf32, #tpu.memory_space<vmem>>, %arg6: memref<64x20xbf16, #tpu.memory_space<vmem>>, %arg7: memref<1x20xf32, #tpu.memory_space<vmem>>, %arg8: memref<20x64xbf16, #tpu.memory_space<vmem>>, %arg9: memref<1x64xf32, #tpu.memory_space<vmem>>, %arg10: memref<64x256xbf16, #tpu.memory_space<vmem>>, %arg11: memref<1x256xf32, #tpu.memory_space<vmem>>, %arg12: memref<256x784xbf16, #tpu.memory_space<vmem>>, %arg13: memref<1x784xf32, #tpu.memory_space<vmem>>, %arg14: memref<2x784xf32, #tpu.memory_space<vmem>>) attributes {dimension_semantics = [#tpu.dimension_semantics<parallel>], iteration_bounds = array<i64: 1>, scalar_prefetch = 0 : i64, scratch_operands = 0 : i64, tpu.core_type = #tpu.core_type<tc>, window_params = [{transform_indices = @transform_0, window_bounds = array<i64: 2, 784>}, {pipeline_mode = #tpu.pipeline_mode<synchronous>, transform_indices = @transform_1, window_bounds = array<i64: 784, 256>}, {pipeline_mode = #tpu.pipeline_mode<synchronous>, transform_indices = @transform_2, window_bounds = array<i64: 1, 256>}, {pipeline_mode = #tpu.pipeline_mode<synchronous>, transform_indices = @transform_3, window_bounds = array<i64: 256, 64>}, {pipeline_mode = #tpu.pipeline_mode<synchronous>, transform_indices = @transform_4, window_bounds = array<i64: 1, 64>}, {pipeline_mode = #tpu.pipeline_mode<synchronous>, transform_indices = @transform_5, window_bounds = array<i64: 64, 20>}, {pipeline_mode = #tpu.pipeline_mode<synchronous>, transform_indices = @transform_6, window_bounds = array<i64: 1, 20>}, {pipeline_mode = #tpu.pipeline_mode<synchronous>, transform_indices = @transform_7, window_bounds = array<i64: 20, 64>}, {pipeline_mode = #tpu.pipeline_mode<synchronous>, transform_indices = @transform_8, window_bounds = array<i64: 1, 64>}, {pipeline_mode = #tpu.pipeline_mode<synchronous>, transform_indices = @transform_9, window_bounds = array<i64: 64, 256>}, {pipeline_mode = #tpu.pipeline_mode<synchronous>, transform_indices = @transform_10, window_bounds = array<i64: 1, 256>}, {pipeline_mode = #tpu.pipeline_mode<synchronous>, transform_indices = @transform_11, window_bounds = array<i64: 256, 784>}, {pipeline_mode = #tpu.pipeline_mode<synchronous>, transform_indices = @transform_12, window_bounds = array<i64: 1, 784>}, {transform_indices = @transform_13, window_bounds = array<i64: 2, 784>}]} {
    %c0 = arith.constant 0 : index
    %c0_0 = arith.constant 0 : index
    %0 = vector.load %arg1[%c0, %c0_0] : memref<2x784xf32, #tpu.memory_space<vmem>>, vector<2x784xf32>
    %1 = arith.truncf %0 : vector<2x784xf32> to vector<2x784xbf16>
    %c0_1 = arith.constant 0 : index
    %c0_2 = arith.constant 0 : index
    %2 = vector.load %arg2[%c0_1, %c0_2] : memref<784x256xbf16, #tpu.memory_space<vmem>>, vector<784x256xbf16>
    %cst = arith.constant dense<0.000000e+00> : vector<2x256xf32>
    %3 = tpu.matmul %1, %2, %cst {dimension_numbers = #tpu.dot_dimension_numbers<[1], [0], [0], [1], [0, 0, 1, 1], [], []>} : vector<2x784xbf16>, vector<784x256xbf16>, vector<2x256xf32> -> vector<2x256xf32>
    %c0_3 = arith.constant 0 : index
    %c0_4 = arith.constant 0 : index
    %4 = vector.load %arg3[%c0_3, %c0_4] : memref<1x256xf32, #tpu.memory_space<vmem>>, vector<1x256xf32>
    %5 = vector.broadcast %4 : vector<1x256xf32> to vector<2x256xf32>
    %6 = arith.addf %3, %5 : vector<2x256xf32>
    %cst_5 = arith.constant 0.000000e+00 : f32
    %7 = vector.broadcast %cst_5 : f32 to vector<2x256xf32>
    %8 = arith.maximumf %6, %7 : vector<2x256xf32>
    %9 = arith.truncf %8 : vector<2x256xf32> to vector<2x256xbf16>
    %c0_6 = arith.constant 0 : index
    %c0_7 = arith.constant 0 : index
    %10 = vector.load %arg4[%c0_6, %c0_7] : memref<256x64xbf16, #tpu.memory_space<vmem>>, vector<256x64xbf16>
    %cst_8 = arith.constant dense<0.000000e+00> : vector<2x64xf32>
    %11 = tpu.matmul %9, %10, %cst_8 {dimension_numbers = #tpu.dot_dimension_numbers<[1], [0], [0], [1], [0, 0, 1, 1], [], []>} : vector<2x256xbf16>, vector<256x64xbf16>, vector<2x64xf32> -> vector<2x64xf32>
    %c0_9 = arith.constant 0 : index
    %c0_10 = arith.constant 0 : index
    %12 = vector.load %arg5[%c0_9, %c0_10] : memref<1x64xf32, #tpu.memory_space<vmem>>, vector<1x64xf32>
    %13 = vector.broadcast %12 : vector<1x64xf32> to vector<2x64xf32>
    %14 = arith.addf %11, %13 : vector<2x64xf32>
    %cst_11 = arith.constant 0.000000e+00 : f32
    %15 = vector.broadcast %cst_11 : f32 to vector<2x64xf32>
    %16 = arith.maximumf %14, %15 : vector<2x64xf32>
    %17 = arith.truncf %16 : vector<2x64xf32> to vector<2x64xbf16>
    %c0_12 = arith.constant 0 : index
    %c0_13 = arith.constant 0 : index
    %18 = vector.load %arg6[%c0_12, %c0_13] : memref<64x20xbf16, #tpu.memory_space<vmem>>, vector<64x20xbf16>
    %cst_14 = arith.constant dense<0.000000e+00> : vector<2x20xf32>
    %19 = tpu.matmul %17, %18, %cst_14 {dimension_numbers = #tpu.dot_dimension_numbers<[1], [0], [0], [1], [0, 0, 1, 1], [], []>} : vector<2x64xbf16>, vector<64x20xbf16>, vector<2x20xf32> -> vector<2x20xf32>
    %c0_15 = arith.constant 0 : index
    %c0_16 = arith.constant 0 : index
    %20 = vector.load %arg7[%c0_15, %c0_16] : memref<1x20xf32, #tpu.memory_space<vmem>>, vector<1x20xf32>
    %21 = vector.broadcast %20 : vector<1x20xf32> to vector<2x20xf32>
    %22 = arith.addf %19, %21 : vector<2x20xf32>
    %cst_17 = arith.constant 0.000000e+00 : f32
    %23 = vector.broadcast %cst_17 : f32 to vector<2x20xf32>
    %24 = arith.maximumf %22, %23 : vector<2x20xf32>
    %25 = arith.truncf %24 : vector<2x20xf32> to vector<2x20xbf16>
    %c0_18 = arith.constant 0 : index
    %c0_19 = arith.constant 0 : index
    %26 = vector.load %arg8[%c0_18, %c0_19] : memref<20x64xbf16, #tpu.memory_space<vmem>>, vector<20x64xbf16>
    %cst_20 = arith.constant dense<0.000000e+00> : vector<2x64xf32>
    %27 = tpu.matmul %25, %26, %cst_20 {dimension_numbers = #tpu.dot_dimension_numbers<[1], [0], [0], [1], [0, 0, 1, 1], [], []>} : vector<2x20xbf16>, vector<20x64xbf16>, vector<2x64xf32> -> vector<2x64xf32>
    %c0_21 = arith.constant 0 : index
    %c0_22 = arith.constant 0 : index
    %28 = vector.load %arg9[%c0_21, %c0_22] : memref<1x64xf32, #tpu.memory_space<vmem>>, vector<1x64xf32>
    %29 = vector.broadcast %28 : vector<1x64xf32> to vector<2x64xf32>
    %30 = arith.addf %27, %29 : vector<2x64xf32>
    %cst_23 = arith.constant 0.000000e+00 : f32
    %31 = vector.broadcast %cst_23 : f32 to vector<2x64xf32>
    %32 = arith.maximumf %30, %31 : vector<2x64xf32>
    %33 = arith.truncf %32 : vector<2x64xf32> to vector<2x64xbf16>
    %c0_24 = arith.constant 0 : index
    %c0_25 = arith.constant 0 : index
    %34 = vector.load %arg10[%c0_24, %c0_25] : memref<64x256xbf16, #tpu.memory_space<vmem>>, vector<64x256xbf16>
    %cst_26 = arith.constant dense<0.000000e+00> : vector<2x256xf32>
    %35 = tpu.matmul %33, %34, %cst_26 {dimension_numbers = #tpu.dot_dimension_numbers<[1], [0], [0], [1], [0, 0, 1, 1], [], []>} : vector<2x64xbf16>, vector<64x256xbf16>, vector<2x256xf32> -> vector<2x256xf32>
    %c0_27 = arith.constant 0 : index
    %c0_28 = arith.constant 0 : index
    %36 = vector.load %arg11[%c0_27, %c0_28] : memref<1x256xf32, #tpu.memory_space<vmem>>, vector<1x256xf32>
    %37 = vector.broadcast %36 : vector<1x256xf32> to vector<2x256xf32>
    %38 = arith.addf %35, %37 : vector<2x256xf32>
    %cst_29 = arith.constant 0.000000e+00 : f32
    %39 = vector.broadcast %cst_29 : f32 to vector<2x256xf32>
    %40 = arith.maximumf %38, %39 : vector<2x256xf32>
    %41 = arith.truncf %40 : vector<2x256xf32> to vector<2x256xbf16>
    %c0_30 = arith.constant 0 : index
    %c0_31 = arith.constant 0 : index
    %42 = vector.load %arg12[%c0_30, %c0_31] : memref<256x784xbf16, #tpu.memory_space<vmem>>, vector<256x784xbf16>
    %cst_32 = arith.constant dense<0.000000e+00> : vector<2x784xf32>
    %43 = tpu.matmul %41, %42, %cst_32 {dimension_numbers = #tpu.dot_dimension_numbers<[1], [0], [0], [1], [0, 0, 1, 1], [], []>} : vector<2x256xbf16>, vector<256x784xbf16>, vector<2x784xf32> -> vector<2x784xf32>
    %c0_33 = arith.constant 0 : index
    %c0_34 = arith.constant 0 : index
    %44 = vector.load %arg13[%c0_33, %c0_34] : memref<1x784xf32, #tpu.memory_space<vmem>>, vector<1x784xf32>
    %45 = vector.broadcast %44 : vector<1x784xf32> to vector<2x784xf32>
    %46 = arith.addf %43, %45 : vector<2x784xf32>
    %cst_35 = arith.constant 0.000000e+00 : f32
    %47 = vector.broadcast %cst_35 : f32 to vector<2x784xf32>
    %48 = arith.subf %47, %46 : vector<2x784xf32>
    %49 = math.exp %48 : vector<2x784xf32>
    %cst_36 = arith.constant 1.000000e+00 : f32
    %50 = vector.broadcast %cst_36 : f32 to vector<2x784xf32>
    %51 = arith.addf %50, %49 : vector<2x784xf32>
    %52 = tpu.reciprocal %51 {approx = true} : vector<2x784xf32> -> vector<2x784xf32>
    %c0_37 = arith.constant 0 : index
    %c0_38 = arith.constant 0 : index
    %53 = vector.load %arg14[%c0_37, %c0_38] : memref<2x784xf32, #tpu.memory_space<vmem>>, vector<2x784xf32>
    tpu.vector_store %arg14[%c0_37, %c0_38], %52 {strides = array<i32>} : memref<2x784xf32, #tpu.memory_space<vmem>>, vector<2x784xf32>,
    return
  }
  func.func @transform_0(%arg0: i32) -> (i32, i32) {
    %c0_i32 = arith.constant 0 : i32
    %c0_i32_0 = arith.constant 0 : i32
    return %arg0, %c0_i32 : i32, i32
  }
  func.func @transform_1(%arg0: i32) -> (i32, i32) {
    %c0_i32 = arith.constant 0 : i32
    %c0_i32_0 = arith.constant 0 : i32
    %c0_i32_1 = arith.constant 0 : i32
    return %c0_i32, %c0_i32_0 : i32, i32
  }
  func.func @transform_2(%arg0: i32) -> (i32, i32) {
    %c0_i32 = arith.constant 0 : i32
    %c0_i32_0 = arith.constant 0 : i32
    %c0_i32_1 = arith.constant 0 : i32
    return %c0_i32, %c0_i32_0 : i32, i32
  }
  func.func @transform_3(%arg0: i32) -> (i32, i32) {
    %c0_i32 = arith.constant 0 : i32
    %c0_i32_0 = arith.constant 0 : i32
    %c0_i32_1 = arith.constant 0 : i32
    return %c0_i32, %c0_i32_0 : i32, i32
  }
  func.func @transform_4(%arg0: i32) -> (i32, i32) {
    %c0_i32 = arith.constant 0 : i32
    %c0_i32_0 = arith.constant 0 : i32
    %c0_i32_1 = arith.constant 0 : i32
    return %c0_i32, %c0_i32_0 : i32, i32
  }
  func.func @transform_5(%arg0: i32) -> (i32, i32) {
    %c0_i32 = arith.constant 0 : i32
    %c0_i32_0 = arith.constant 0 : i32
    %c0_i32_1 = arith.constant 0 : i32
    return %c0_i32, %c0_i32_0 : i32, i32
  }
  func.func @transform_6(%arg0: i32) -> (i32, i32) {
    %c0_i32 = arith.constant 0 : i32
    %c0_i32_0 = arith.constant 0 : i32
    %c0_i32_1 = arith.constant 0 : i32
    return %c0_i32, %c0_i32_0 : i32, i32
  }
  func.func @transform_7(%arg0: i32) -> (i32, i32) {
    %c0_i32 = arith.constant 0 : i32
    %c0_i32_0 = arith.constant 0 : i32
    %c0_i32_1 = arith.constant 0 : i32
    return %c0_i32, %c0_i32_0 : i32, i32
  }
  func.func @transform_8(%arg0: i32) -> (i32, i32) {
    %c0_i32 = arith.constant 0 : i32
    %c0_i32_0 = arith.constant 0 : i32
    %c0_i32_1 = arith.constant 0 : i32
    return %c0_i32, %c0_i32_0 : i32, i32
  }
  func.func @transform_9(%arg0: i32) -> (i32, i32) {
    %c0_i32 = arith.constant 0 : i32
    %c0_i32_0 = arith.constant 0 : i32
    %c0_i32_1 = arith.constant 0 : i32
    return %c0_i32, %c0_i32_0 : i32, i32
  }
  func.func @transform_10(%arg0: i32) -> (i32, i32) {
    %c0_i32 = arith.constant 0 : i32
    %c0_i32_0 = arith.constant 0 : i32
    %c0_i32_1 = arith.constant 0 : i32
    return %c0_i32, %c0_i32_0 : i32, i32
  }
  func.func @transform_11(%arg0: i32) -> (i32, i32) {
    %c0_i32 = arith.constant 0 : i32
    %c0_i32_0 = arith.constant 0 : i32
    %c0_i32_1 = arith.constant 0 : i32
    return %c0_i32, %c0_i32_0 : i32, i32
  }
  func.func @transform_12(%arg0: i32) -> (i32, i32) {
    %c0_i32 = arith.constant 0 : i32
    %c0_i32_0 = arith.constant 0 : i32
    %c0_i32_1 = arith.constant 0 : i32
    return %c0_i32, %c0_i32_0 : i32, i32
  }
  func.func @transform_13(%arg0: i32) -> (i32, i32) {
    %c0_i32 = arith.constant 0 : i32
    %c0_i32_0 = arith.constant 0 : i32
    return %arg0, %c0_i32 : i32, i32
  }
}

</mosaic_0001>

<bundles_post_ra>
// kernel: tpu_custom_call.1
= control target key start
LH: loop header
LB: loop body
LE: loop exit
PB: predicated region body
PF: predicated region fallthrough
CT: control target
= control target key end

     0   :  { %v3040_v7 = vmov 1983009808   ;;  %v54_v9 = vlaneseq  ;;  %v3041_v51 = vmov 0   ;;  %vm697_vm0 = vcmask 130048   ;;  %s3945_s0 = inlined_call_operand.vmem [shape: f32[2,784], index: 0, kind: input, shape index: {}]   ;;  %s3946_s1 = inlined_call_operand.vmem [shape: bf16[784,256], index: 1, kind: input, shape index: {}]   ;;  %s3947_s2 = inlined_call_operand.vmem [shape: f32[1,256], index: 2, kind: input, shape index: {}]   ;;  %s3948_s3 = inlined_call_operand.vmem [shape: bf16[256,64], index: 3, kind: input, shape index: {}]   ;;  %s3949_s4 = inlined_call_operand.vmem [shape: f32[1,64], index: 4, kind: input, shape index: {}]   ;;  %s3950_s5 = inlined_call_operand.vmem [shape: bf16[64,20], index: 5, kind: input, shape index: {}]   ;;  %s3951_s6 = inlined_call_operand.vmem [shape: f32[1,20], index: 6, kind: input, shape index: {}]   ;;  %s3952_s7 = inlined_call_operand.vmem [shape: bf16[20,64], index: 7, kind: input, shape index: {}]   ;;  %s3953_s8 = inlined_call_operand.vmem [shape: f32[1,64], index: 8, kind: input, shape index: {}]   ;;  %s3954_s9 = inlined_call_operand.vmem [shape: bf16[64,256], index: 9, kind: input, shape index: {}]   ;;  %s3955_s10 = inlined_call_operand.vmem [shape: f32[1,256], index: 10, kind: input, shape index: {}]   ;;  %s3956_s11 = inlined_call_operand.vmem [shape: bf16[256,784], index: 11, kind: input, shape index: {}]   ;;  %s3957_s12 = inlined_call_operand.vmem [shape: f32[1,784], index: 12, kind: input, shape index: {}]   ;;  %s3958_s13 = inlined_call_operand.hbm [shape: f32[2,784], index: 13, kind: output, shape index: {}]  }
   0x1   :  { %v2645_v0 = vld [vmem:[%s3946_s1 + $0x4] ss:$8 sps:$4 sm:$0xff]   ;;  %v2647_v1 = vld [vmem:[%s3946_s1] ss:$8 sps:$4 sm:$0xff]   ;;  %v2648_v2 = vld [vmem:[%s3946_s1 + $0x14] ss:$8 sps:$4 sm:$0xff]   ;;  %v52_v8 = vunpack.c.l.s4 %v3040_v7  ;;  %856 = vmatprep.mubr.bf16.mxu1 %v3041_v51 }
   0x2   :  { %701 = vmatprep.subr.bf16.mxu0 %v2645_v0  ;;  %v2650_v3 = vld [vmem:[%s3946_s1 + $0x10] ss:$8 sps:$4 sm:$0xff]   ;;  %v2651_v4 = vld [vmem:[%s3946_s1 + $0x24] ss:$8 sps:$4 sm:$0xff]   ;;  %v2653_v5 = vld [vmem:[%s3946_s1 + $0x20] ss:$8 sps:$4 sm:$0xff]  }
   0x3   :  { %702 = vmatpush1.bf16.msra.mxu0 %v2647_v1  ;;  %v2654_v6 = vld [vmem:[%s3946_s1 + $0x34] ss:$8 sps:$4 sm:$0xff]   ;;  %v2656_v10 = vld [vmem:[%s3946_s1 + $0x30] ss:$8 sps:$4 sm:$0xff]   ;;  %v2657_v11 = vld [vmem:[%s3946_s1 + $0x44] ss:$8 sps:$4 sm:$0xff]   ;;  %v53_v12 = vunpack.c.0.s8 %v52_v8 }
   0x4   :  { %703 = vmatprep.subr.bf16.mxu0 %v2648_v2  ;;  %v3142_v13 = vshrl.u32 %v54_v9, 7  ;;  %v2659_v14 = vld [vmem:[%s3946_s1 + $0x40] ss:$8 sps:$4 sm:$0xff]   ;;  %v2660_v15 = vld [vmem:[%s3946_s1 + $0x54] ss:$8 sps:$4 sm:$0xff]  }
   0x5   :  { %v2662_v17 = vld [vmem:[%s3946_s1 + $0x50] ss:$8 sps:$4 sm:$0xff]   ;;  %v2663_v18 = vld [vmem:[%s3946_s1 + $0x64] ss:$8 sps:$4 sm:$0xff]   ;;  %v2665_v21 = vld [vmem:[%s3946_s1 + $0x60] ss:$8 sps:$4 sm:$0xff]  }
   0x6   :  { %v3151_v16 = vsub.s32 %v53_v12, %v3142_v13  ;;  %v46_v19 = vld [vmem:[%s3945_s0] sm:$0xff]  ;;  %v2666_v22 = vld [vmem:[%s3946_s1 + $0x74] ss:$8 sps:$4 sm:$0xff]   ;;  %v2668_v25 = vld [vmem:[%s3946_s1 + $0x70] ss:$8 sps:$4 sm:$0xff]  }
   0x7   :  { %704 = vmatpush1.bf16.msra.mxu0 %v2650_v3  ;;  %v2669_v26 = vld [vmem:[%s3946_s1 + $0x84] ss:$8 sps:$4 sm:$0xff]   ;;  %v2671_v27 = vld [vmem:[%s3946_s1 + $0x80] ss:$8 sps:$4 sm:$0xff]   ;;  %v2672_v28 = vld [vmem:[%s3946_s1 + $0x94] ss:$8 sps:$4 sm:$0xff]   ;;  %v50_v38 = vcombine.high %v46_v19, %v46_v19 }
   0x8   :  { %705 = vmatprep.subr.bf16.mxu0 %v2651_v4  ;;  %v57_v20 = vrot.slane %v46_v19, %v3151_v16  ;;  %v2674_v29 = vld [vmem:[%s3946_s1 + $0x90] ss:$8 sps:$4 sm:$0xff]   ;;  %v2675_v30 = vld [vmem:[%s3946_s1 + $0xa4] ss:$8 sps:$4 sm:$0xff]   ;;  %v2677_v31 = vld [vmem:[%s3946_s1 + $0xa0] ss:$8 sps:$4 sm:$0xff]  }
   0x9   :  { %v2678_v32 = vld [vmem:[%s3946_s1 + $0xb4] ss:$8 sps:$4 sm:$0xff]   ;;  %v2680_v33 = vld [vmem:[%s3946_s1 + $0xb0] ss:$8 sps:$4 sm:$0xff]   ;;  %v2681_v34 = vld [vmem:[%s3946_s1 + $0xc4] ss:$8 sps:$4 sm:$0xff]   ;;  %v3215_v41 = vrot.slane %v50_v38, %v3151_v16 }
   0xa   :  { %v65_v23 = vcombine.high %v57_v20, %v57_v20  ;;  %v2683_v35 = vld [vmem:[%s3946_s1 + $0xc0] ss:$8 sps:$4 sm:$0xff]   ;;  %v2684_v36 = vld [vmem:[%s3946_s1 + $0xd4] ss:$8 sps:$4 sm:$0xff]   ;;  %v2686_v37 = vld [vmem:[%s3946_s1 + $0xd0] ss:$8 sps:$4 sm:$0xff]   ;;  %v90_v47 = vpack.c.bf16 %v57_v20, %v57_v20 }
   0xb   :  { %706 = vmatpush1.bf16.msra.mxu0 %v2653_v5  ;;  %v2687_v39 = vld [vmem:[%s3946_s1 + $0xe4] ss:$8 sps:$4 sm:$0xff]   ;;  %v2689_v40 = vld [vmem:[%s3946_s1 + $0xe0] ss:$8 sps:$4 sm:$0xff]   ;;  %v2690_v42 = vld [vmem:[%s3946_s1 + $0xf4] ss:$8 sps:$4 sm:$0xff]   ;;  %v66_v44 = vcombine.high %v3215_v41, %v3215_v41  ;;  %v92_v38 = vpack.c.bf16 %v3215_v41, %v3215_v41 }
   0xc   :  { %707 = vmatprep.subr.bf16.mxu0 %v2654_v6  ;;  %v91_v24 = vpack.c.bf16 %v65_v23, %v65_v23  ;;  %v2692_v43 = vld [vmem:[%s3946_s1 + $0xf0] ss:$8 sps:$4 sm:$0xff]   ;;  %v2696_v45 = vld [vmem:[%s3946_s1 + $0x104] ss:$8 sps:$4 sm:$0xff]   ;;  %v2694_v46 = vld [vmem:[%s3946_s1 + $0x100] ss:$8 sps:$4 sm:$0xff]  }
   0xd   :  { %v93_v48 = vpack.c.bf16 %v66_v44, %v66_v44  ;;  %v2787_v49 = vld [vmem:[%s3946_s1 + $0x304] ss:$8 sps:$4 sm:$0xff]   ;;  %v2699_v50 = vld [vmem:[%s3946_s1 + $0x114] ss:$8 sps:$4 sm:$0xff]   ;;  %v2792_v52 = vld [vmem:[%s3946_s1 + $0x300] ss:$8 sps:$4 sm:$0xff]  }
   0xe   :  { %733 = vmatprep.mubr.bf16.mxu0 %v91_v24  ;;  %824 = vmatprep.subr.bf16.mxu1 %v2787_v49  ;;  %v3244_v53 = vld [vmem:[%s3945_s0 + $0x8] sm:$0x3f]  ;;  %v2794_v55 = vld [vmem:[%s3948_s3 + $0x40] sm:$0xff]   ;;  %v2697_v56 = vld [vmem:[%s3946_s1 + $0x110] ss:$8 sps:$4 sm:$0xff]  }
   0xf   :  { %708 = vmatpush1.bf16.msra.mxu0 %v2656_v10  ;;  %v67_v54 = vcombine.high %v3244_v53, %v3244_v53  ;;  %v2702_v57 = vld [vmem:[%s3946_s1 + $0x124] ss:$8 sps:$4 sm:$0xff]   ;;  %825 = vmatpush1.bf16.msra.mxu1 %v2792_v52  ;;  %v2700_v62 = vld [vmem:[%s3946_s1 + $0x120] ss:$8 sps:$4 sm:$0xff]   ;;  %v2705_v63 = vld [vmem:[%s3946_s1 + $0x134] ss:$8 sps:$4 sm:$0xff]  }
  0x10   :  { %709 = vmatprep.subr.bf16.mxu0 %v2657_v11  ;;  %2556 = vmatprep.subr.bf16.mxu1 %v2794_v55  ;;  %v2795_v59 = vld [vmem:[%s3948_s3] sm:$0xff]   ;;  %v2796_v61 = vld [vmem:[%s3948_s3 + $0x48] sm:$0xff]   ;;  %v2703_v0 = vld [vmem:[%s3946_s1 + $0x130] ss:$8 sps:$4 sm:$0xff]  }
  0x11   :  { %v81_v58 = vrot.slane %v67_v54, %v3151_v16  ;;  %v2797_v1 = vld [vmem:[%s3948_s3 + $0x8] sm:$0xff]   ;;  %v2798_v3 = vld [vmem:[%s3948_s3 + $0x50] sm:$0xff]   ;;  %v2800_v5 = vld [vmem:[%s3948_s3 + $0x58] sm:$0xff]  }
  0x12   :  { %v2708_v2 = vld [vmem:[%s3946_s1 + $0x144] ss:$8 sps:$4 sm:$0xff]   ;;  %v2799_v4 = vld [vmem:[%s3948_s3 + $0x10] sm:$0xff]   ;;  %v2706_v6 = vld [vmem:[%s3946_s1 + $0x140] ss:$8 sps:$4 sm:$0xff]  }
  0x13   :  { %710 = vmatpush1.bf16.msra.mxu0 %v2659_v14  ;;  %v96_v60 = vpack.c.bf16 %v81_v58, %v81_v58  ;;  %v2711_v7 = vld [vmem:[%s3946_s1 + $0x154] ss:$8 sps:$4 sm:$0xff]   ;;  %v2802_v9 = vld [vmem:[%s3948_s3 + $0x60] sm:$0xff]   ;;  %v2709_v10 = vld [vmem:[%s3946_s1 + $0x150] ss:$8 sps:$4 sm:$0xff]  }
  0x14   :  { %711 = vmatprep.subr.bf16.mxu0 %v2660_v15  ;;  %v2801_v8 = vld [vmem:[%s3948_s3 + $0x18] sm:$0xff]   ;;  %v2714_v11 = vld [vmem:[%s3946_s1 + $0x164] ss:$8 sps:$4 sm:$0xff]   ;;  %v2712_v14 = vld [vmem:[%s3946_s1 + $0x160] ss:$8 sps:$4 sm:$0xff]  }
  0x15   :  { %2407 = vmatmul.mubr.msk.bf16.vlgmr.msra.gmra.mrb[0].mxu1 %vm697_vm0, %v96_v60  ;;  %v2803_v12 = vld [vmem:[%s3948_s3 + $0x20] sm:$0xff]   ;;  %v2717_v15 = vld [vmem:[%s3946_s1 + $0x174] ss:$8 sps:$4 sm:$0xff]  }
  0x16   :  { %2557 = vmatpush3.bf16.msra.mxu1 %v2795_v59  ;;  %v2718_v19 = vld [vmem:[%s3946_s1 + $0x180] ss:$8 sps:$4 sm:$0xff]   ;;  %v2723_v20 = vld [vmem:[%s3946_s1 + $0x194] ss:$8 sps:$4 sm:$0xff]  }
  0x17   :  { %712 = vmatpush1.bf16.msra.mxu0 %v2662_v17  ;;  %2558 = vmatprep.subr.bf16.mxu1 %v2796_v61  ;;  %v2715_v17 = vld [vmem:[%s3946_s1 + $0x170] ss:$8 sps:$4 sm:$0xff]   ;;  %v2724_v23 = vld [vmem:[%s3946_s1 + $0x1a0] ss:$8 sps:$4 sm:$0xff]   ;;  %v2729_v24 = vld [vmem:[%s3946_s1 + $0x1b4] ss:$8 sps:$4 sm:$0xff]  }
  0x18   :  { %713 = vmatprep.subr.bf16.mxu0 %v2663_v18  ;;  %v2720_v18 = vld [vmem:[%s3946_s1 + $0x184] ss:$8 sps:$4 sm:$0xff]  }
  0x1a   :  { %2559 = vmatpush3.bf16.msra.mxu1 %v2797_v1 }
  0x1b   :  { %714 = vmatpush1.bf16.msra.mxu0 %v2665_v21  ;;  %2560 = vmatprep.subr.bf16.mxu1 %v2798_v3  ;;  %v2721_v21 = vld [vmem:[%s3946_s1 + $0x190] ss:$8 sps:$4 sm:$0xff]  }
  0x1c   :  { %715 = vmatprep.subr.bf16.mxu0 %v2666_v22  ;;  %v2726_v22 = vld [vmem:[%s3946_s1 + $0x1a4] ss:$8 sps:$4 sm:$0xff]  }
  0x1e   :  { %2561 = vmatpush3.bf16.msra.mxu1 %v2799_v4 }
  0x1f   :  { %716 = vmatpush1.bf16.msra.mxu0 %v2668_v25  ;;  %2562 = vmatprep.subr.bf16.mxu1 %v2800_v5  ;;  %v2727_v25 = vld [vmem:[%s3946_s1 + $0x1b0] ss:$8 sps:$4 sm:$0xff]  }
  0x20   :  { %717 = vmatprep.subr.bf16.mxu0 %v2669_v26  ;;  %v2732_v26 = vld [vmem:[%s3946_s1 + $0x1c4] ss:$8 sps:$4 sm:$0xff]  }
  0x22   :  { %2563 = vmatpush3.bf16.msra.mxu1 %v2801_v8 }
  0x23   :  { %718 = vmatpush1.bf16.msra.mxu0 %v2671_v27  ;;  %2564 = vmatprep.subr.bf16.mxu1 %v2802_v9  ;;  %v2730_v27 = vld [vmem:[%s3946_s1 + $0x1c0] ss:$8 sps:$4 sm:$0xff]  }
  0x24   :  { %719 = vmatprep.subr.bf16.mxu0 %v2672_v28  ;;  %v2735_v28 = vld [vmem:[%s3946_s1 + $0x1d4] ss:$8 sps:$4 sm:$0xff]  }
  0x26   :  { %2565 = vmatpush3.bf16.msra.mxu1 %v2803_v12 }
  0x27   :  { %720 = vmatpush1.bf16.msra.mxu0 %v2674_v29  ;;  %v2733_v29 = vld [vmem:[%s3946_s1 + $0x1d0] ss:$8 sps:$4 sm:$0xff]  }
  0x28   :  { %721 = vmatprep.subr.bf16.mxu0 %v2675_v30  ;;  %v2738_v30 = vld [vmem:[%s3946_s1 + $0x1e4] ss:$8 sps:$4 sm:$0xff]  }
  0x2b   :  { %722 = vmatpush1.bf16.msra.mxu0 %v2677_v31  ;;  %v2736_v31 = vld [vmem:[%s3946_s1 + $0x1e0] ss:$8 sps:$4 sm:$0xff]  }
  0x2c   :  { %723 = vmatprep.subr.bf16.mxu0 %v2678_v32  ;;  %v2741_v32 = vld [vmem:[%s3946_s1 + $0x1f4] ss:$8 sps:$4 sm:$0xff]  }
  0x2f   :  { %724 = vmatpush1.bf16.msra.mxu0 %v2680_v33  ;;  %v3365_v33 = vrot.slane %v3244_v53, %v3151_v16 }
  0x30   :  { %725 = vmatprep.subr.bf16.mxu0 %v2681_v34  ;;  %v2739_v34 = vld [vmem:[%s3946_s1 + $0x1f0] ss:$8 sps:$4 sm:$0xff]  }
  0x33   :  { %726 = vmatpush1.bf16.msra.mxu0 %v2683_v35  ;;  %v2744_v35 = vld [vmem:[%s3946_s1 + $0x204] ss:$8 sps:$4 sm:$0xff]  }
  0x34   :  { %727 = vmatprep.subr.bf16.mxu0 %v2684_v36  ;;  %v82_v36 = vcombine.high %v3365_v33, %v3365_v33 }
  0x37   :  { %728 = vmatpush1.bf16.msra.mxu0 %v2686_v37  ;;  %v2742_v37 = vld [vmem:[%s3946_s1 + $0x200] ss:$8 sps:$4 sm:$0xff]  }
  0x38   :  { %729 = vmatprep.subr.bf16.mxu0 %v2687_v39  ;;  %v2747_v39 = vld [vmem:[%s3946_s1 + $0x214] ss:$8 sps:$4 sm:$0xff]  }
  0x3b   :  { %730 = vmatpush1.bf16.msra.mxu0 %v2689_v40  ;;  %v95_v40 = vpack.c.bf16 %v82_v36, %v82_v36 }
  0x3c   :  { %731 = vmatprep.subr.bf16.mxu0 %v2690_v42 }
  0x3f   :  { %732 = vmatpush1.bf16.msra.mxu0 %v2692_v43 }
  0x40   :  { %742 = vmatprep.subr.bf16.mxu0 %v2696_v45 }
  0x42   :  { %734 = vmatmul.mubr.bf16.vlgmr.msra.gmra.mrb[0].mxu0 %v90_v47 }
  0x43   :  { %743 = vmatpush1.bf16.msra.mxu0 %v2694_v46  ;;  %774 = vmatprep.mubr.bf16.mxu0 %v93_v48 }
  0x44   :  { %744 = vmatprep.subr.bf16.mxu0 %v2699_v50 }
  0x47   :  { %745 = vmatpush1.bf16.msra.mxu0 %v2697_v56 }
  0x48   :  { %746 = vmatprep.subr.bf16.mxu0 %v2702_v57 }
  0x4b   :  { %747 = vmatpush1.bf16.msra.mxu0 %v2700_v62 }
  0x4c   :  { %748 = vmatprep.subr.bf16.mxu0 %v2705_v63 }
  0x4f   :  { %749 = vmatpush1.bf16.msra.mxu0 %v2703_v0 }
  0x50   :  { %750 = vmatprep.subr.bf16.mxu0 %v2708_v2 }
  0x53   :  { %751 = vmatpush1.bf16.msra.mxu0 %v2706_v6 }
  0x54   :  { %752 = vmatprep.subr.bf16.mxu0 %v2711_v7 }
  0x57   :  { %753 = vmatpush1.bf16.msra.mxu0 %v2709_v10 }
  0x58   :  { %754 = vmatprep.subr.bf16.mxu0 %v2714_v11 }
  0x5b   :  { %755 = vmatpush1.bf16.msra.mxu0 %v2712_v14 }
  0x5c   :  { %756 = vmatprep.subr.bf16.mxu0 %v2717_v15 }
  0x5f   :  { %757 = vmatpush1.bf16.msra.mxu0 %v2715_v17 }
  0x60   :  { %758 = vmatprep.subr.bf16.mxu0 %v2720_v18 }
  0x63   :  { %759 = vmatpush1.bf16.msra.mxu0 %v2718_v19 }
  0x64   :  { %760 = vmatprep.subr.bf16.mxu0 %v2723_v20 }
  0x67   :  { %761 = vmatpush1.bf16.msra.mxu0 %v2721_v21 }
  0x68   :  { %762 = vmatprep.subr.bf16.mxu0 %v2726_v22 }
  0x6b   :  { %763 = vmatpush1.bf16.msra.mxu0 %v2724_v23 }
  0x6c   :  { %764 = vmatprep.subr.bf16.mxu0 %v2729_v24 }
  0x6f   :  { %765 = vmatpush1.bf16.msra.mxu0 %v2727_v25 }
  0x70   :  { %766 = vmatprep.subr.bf16.mxu0 %v2732_v26 }
  0x73   :  { %767 = vmatpush1.bf16.msra.mxu0 %v2730_v27 }
  0x74   :  { %768 = vmatprep.subr.bf16.mxu0 %v2735_v28 }
  0x77   :  { %769 = vmatpush1.bf16.msra.mxu0 %v2733_v29 }
  0x78   :  { %770 = vmatprep.subr.bf16.mxu0 %v2738_v30 }
  0x7b   :  { %771 = vmatpush1.bf16.msra.mxu0 %v2736_v31 }
  0x7c   :  { %772 = vmatprep.subr.bf16.mxu0 %v2741_v32 }
  0x7f   :  { %773 = vmatpush1.bf16.msra.mxu0 %v2739_v34 }
  0x80   :  { %783 = vmatprep.subr.bf16.mxu0 %v2744_v35 }
  0x81   :  { %18 = vsyncpa [#allocation3], 0  ;;  %v2745_v42 = vld [vmem:[%s3946_s1 + $0x210] ss:$8 sps:$4 sm:$0xff]   ;;  %v2750_v41 = vld [vmem:[%s3946_s1 + $0x224] ss:$8 sps:$4 sm:$0xff]   ;;  %v94_v8 = vpack.c.bf16 %v3365_v33, %v3365_v33 }
  0x82   :  { %775 = vmatmul.mubr.bf16.vlgmr.msra.gmra.mrb[0].mxu0 %v92_v38  ;;  %v2748_v43 = vld [vmem:[%s3946_s1 + $0x220] ss:$8 sps:$4 sm:$0xff]   ;;  %v2753_v44 = vld [vmem:[%s3946_s1 + $0x234] ss:$8 sps:$4 sm:$0xff]   ;;  %v2751_v45 = vld [vmem:[%s3946_s1 + $0x230] ss:$8 sps:$4 sm:$0xff]  }
  0x83   :  { %784 = vmatpush1.bf16.msra.mxu0 %v2742_v37  ;;  %815 = vmatprep.mubr.bf16.mxu0 %v95_v40  ;;  %v2756_v46 = vld [vmem:[%s3946_s1 + $0x244] ss:$8 sps:$4 sm:$0xff]   ;;  %v2754_v47 = vld [vmem:[%s3946_s1 + $0x240] ss:$8 sps:$4 sm:$0xff]   ;;  %v2759_v48 = vld [vmem:[%s3946_s1 + $0x254] ss:$8 sps:$4 sm:$0xff]  }
  0x84   :  { %785 = vmatprep.subr.bf16.mxu0 %v2747_v39  ;;  %v2757_v49 = vld [vmem:[%s3946_s1 + $0x250] ss:$8 sps:$4 sm:$0xff]   ;;  %v2762_v50 = vld [vmem:[%s3946_s1 + $0x264] ss:$8 sps:$4 sm:$0xff]   ;;  %v2760_v52 = vld [vmem:[%s3946_s1 + $0x260] ss:$8 sps:$4 sm:$0xff]  }
  0x85   :  { %v2765_v53 = vld [vmem:[%s3946_s1 + $0x274] ss:$8 sps:$4 sm:$0xff]   ;;  %v2763_v54 = vld [vmem:[%s3946_s1 + $0x270] ss:$8 sps:$4 sm:$0xff]   ;;  %v2804_v55 = vld [vmem:[%s3948_s3 + $0x68] sm:$0xff]   ;;  %v3042_v20 = vmov 0.0  }
  0x86   :  { %v2768_v56 = vld [vmem:[%s3946_s1 + $0x284] ss:$8 sps:$4 sm:$0xff]   ;;  %2566 = vmatprep.subr.bf16.mxu1 %v2804_v55  ;;  %v2766_v57 = vld [vmem:[%s3946_s1 + $0x280] ss:$8 sps:$4 sm:$0xff]   ;;  %v2771_v58 = vld [vmem:[%s3946_s1 + $0x294] ss:$8 sps:$4 sm:$0xff]  }
  0x87   :  { %786 = vmatpush1.bf16.msra.mxu0 %v2745_v42  ;;  %v2769_v59 = vld [vmem:[%s3946_s1 + $0x290] ss:$8 sps:$4 sm:$0xff]   ;;  %v2774_v60 = vld [vmem:[%s3946_s1 + $0x2a4] ss:$8 sps:$4 sm:$0xff]   ;;  %v2772_v61 = vld [vmem:[%s3946_s1 + $0x2a0] ss:$8 sps:$4 sm:$0xff]  }
  0x88   :  { %787 = vmatprep.subr.bf16.mxu0 %v2750_v41  ;;  %v2777_v62 = vld [vmem:[%s3946_s1 + $0x2b4] ss:$8 sps:$4 sm:$0xff]   ;;  %v2775_v63 = vld [vmem:[%s3946_s1 + $0x2b0] ss:$8 sps:$4 sm:$0xff]   ;;  %v2780_v0 = vld [vmem:[%s3946_s1 + $0x2c4] ss:$8 sps:$4 sm:$0xff]  }
  0x89   :  { %v2778_v1 = vld [vmem:[%s3946_s1 + $0x2c0] ss:$8 sps:$4 sm:$0xff]   ;;  %v2783_v2 = vld [vmem:[%s3946_s1 + $0x2d4] ss:$8 sps:$4 sm:$0xff]   ;;  %v2781_v3 = vld [vmem:[%s3946_s1 + $0x2d0] ss:$8 sps:$4 sm:$0xff]  }
  0x8a   :  { %v2786_v4 = vld [vmem:[%s3946_s1 + $0x2e4] ss:$8 sps:$4 sm:$0xff]   ;;  %v2784_v5 = vld [vmem:[%s3946_s1 + $0x2e0] ss:$8 sps:$4 sm:$0xff]   ;;  %v2791_v6 = vld [vmem:[%s3946_s1 + $0x2f4] ss:$8 sps:$4 sm:$0xff]  }
  0x8b   :  { %788 = vmatpush1.bf16.msra.mxu0 %v2748_v43  ;;  %v2789_v7 = vld [vmem:[%s3946_s1 + $0x2f0] ss:$8 sps:$4 sm:$0xff]   ;;  %v2805_v9 = vld [vmem:[%s3948_s3 + $0x28] sm:$0xff]   ;;  %v3491_v21 = vsub.s32 0, %v3142_v13  ;;  %v195_v22 = vld [vmem:[%s3947_s2] sm:$0x3] }
  0x8c   :  { %789 = vmatprep.subr.bf16.mxu0 %v2753_v44  ;;  %2567 = vmatpush3.bf16.msra.mxu1 %v2805_v9  ;;  %v2806_v10 = vld [vmem:[%s3948_s3 + $0x70] sm:$0xff]   ;;  %v2808_v12 = vld [vmem:[%s3948_s3 + $0x78] sm:$0xff]   ;;  %v3497_v23 = vsub.s32 1, %v3142_v13  ;;  %v2810_v37 = vld [vmem:[%s3950_s5] sm:$0xff]   ;;  %vm3043_vm1 = vmmov 0   ;;  %vm1085_vm2 = vcmask 523264  }
  0x8d   :  { %v2807_v11 = vld [vmem:[%s3948_s3 + $0x30] sm:$0xff]   ;;  %2568 = vmatprep.subr.bf16.mxu1 %v2806_v10  ;;  %v2809_v15 = vld [vmem:[%s3948_s3 + $0x38] sm:$0xff]   ;;  %v200_v24 = vrot.slane %v195_v22, %v3491_v21  ;;  %v2811_v39 = vld [vmem:[%s3950_s5 + $0x8] sm:$0xff]   ;;  %vm1154_vm3 = vcmask 1041408   ;;  %vm1150_vm4 = vcmask 162816   ;;  %vm2290_vm5 = vcmask 1043458  }
  0x8e   :  { %v204_v25 = vrot.slane %v195_v22, %v3497_v23  ;;  %v2812_v40 = vld [vmem:[%s3950_s5 + $0x10] sm:$0xff]   ;;  %v2813_v42 = vld [vmem:[%s3950_s5 + $0x18] sm:$0xff]   ;;  %v2408_v43 = vld [vmem:[%s3949_s4] ss:$0 sm:$0xff]  ;;  %vm2292_vm7 = vcmask 128004  }
  0x8f   :  { %790 = vmatpush1.bf16.msra.mxu0 %v2751_v45  ;;  %v2818_v55 = vld [vmem:[%s3954_s9 + $0x4] ss:$8 sps:$4 sm:$0xff]   ;;  %v2867_v22 = vld [vmem:[%s3956_s11 + $0x160] ss:$28 sps:$4 sm:$0xff]   ;;  %vm2291_vm6 = vmor %vm2290_vm5, %vm1154_vm3 }
  0x90   :  { %791 = vmatprep.subr.bf16.mxu0 %v2756_v46  ;;  %2569 = vmatpush3.bf16.msra.mxu1 %v2807_v11  ;;  %v2837_v9 = vld [vmem:[%s3956_s11 + $0x48] ss:$28 sps:$4 sm:$0xff]   ;;  %v2843_v11 = vld [vmem:[%s3956_s11 + $0x80] ss:$28 sps:$4 sm:$0xff]   ;;  %vm2293_vm8 = vmor %vm2292_vm7, %vm2291_vm6 }
  0x91   :  { %2570 = vmatprep.subr.bf16.mxu1 %v2808_v12  ;;  %v2839_v10 = vld [vmem:[%s3956_s11 + $0x4c] ss:$28 sps:$4 sm:$0xff]   ;;  %v2845_v12 = vld [vmem:[%s3956_s11 + $0x84] ss:$28 sps:$4 sm:$0xff]  }
  0x93   :  { %792 = vmatpush1.bf16.msra.mxu0 %v2754_v47 }
  0x94   :  { %793 = vmatprep.subr.bf16.mxu0 %v2759_v48  ;;  %2571 = vmatpush3.bf16.msra.mxu1 %v2809_v15  ;;  %v2851_v15 = vld [vmem:[%s3956_s11 + $0xbc] ss:$28 sps:$4 sm:$0xff]  }
  0x95   :  { %2608 = vmatprep.subr.bf16.mxu1 %v3042_v20 }
  0x97   :  { %794 = vmatpush1.bf16.msra.mxu0 %v2757_v49 }
  0x98   :  { %795 = vmatprep.subr.bf16.mxu0 %v2762_v50  ;;  %v2814_v50 = vld [vmem:[%s3952_s7] sm:$0xff]  }
  0x9b   :  { %796 = vmatpush1.bf16.msra.mxu0 %v2760_v52 }
  0x9c   :  { %797 = vmatprep.subr.bf16.mxu0 %v2765_v53  ;;  %v2815_v53 = vld [vmem:[%s3952_s7 + $0x8] ss:$0 sps:$4 sm:$0x33]  }
  0x9f   :  { %798 = vmatpush1.bf16.msra.mxu0 %v2763_v54  ;;  %v1156_v54 = vsel %vm1154_vm3, %v2815_v53, 0  ;;  %v2848_v53 = vld [vmem:[%s3956_s11 + $0xac] ss:$28 sps:$4 sm:$0xff]  }
  0xa0   :  { %799 = vmatprep.subr.bf16.mxu0 %v2768_v56  ;;  %v2425_v56 = vld [vmem:[%s3951_s6] ss:$0 sm:$0xff] }
  0xa3   :  { %800 = vmatpush1.bf16.msra.mxu0 %v2766_v57 }
  0xa4   :  { %801 = vmatprep.subr.bf16.mxu0 %v2771_v58 }
  0xa7   :  { %802 = vmatpush1.bf16.msra.mxu0 %v2769_v59 }
  0xa8   :  { %803 = vmatprep.subr.bf16.mxu0 %v2774_v60 }
  0xab   :  { %804 = vmatpush1.bf16.msra.mxu0 %v2772_v61 }
  0xac   :  { %805 = vmatprep.subr.bf16.mxu0 %v2777_v62 }
  0xaf   :  { %806 = vmatpush1.bf16.msra.mxu0 %v2775_v63  ;;  %v2816_v63 = vld [vmem:[%s3954_s9] ss:$8 sps:$4 sm:$0xff]  }
  0xb0   :  { %807 = vmatprep.subr.bf16.mxu0 %v2780_v0 }
  0xb3   :  { %808 = vmatpush1.bf16.msra.mxu0 %v2778_v1  ;;  %v2821_v1 = vld [vmem:[%s3954_s9 + $0x14] ss:$8 sps:$4 sm:$0xff]  }
  0xb4   :  { %809 = vmatprep.subr.bf16.mxu0 %v2783_v2  ;;  %v2819_v2 = vld [vmem:[%s3954_s9 + $0x10] ss:$8 sps:$4 sm:$0xff]  }
  0xb7   :  { %810 = vmatpush1.bf16.msra.mxu0 %v2781_v3  ;;  %v2824_v3 = vld [vmem:[%s3954_s9 + $0x24] ss:$8 sps:$4 sm:$0xff]  }
  0xb8   :  { %811 = vmatprep.subr.bf16.mxu0 %v2786_v4  ;;  %v2822_v4 = vld [vmem:[%s3954_s9 + $0x20] ss:$8 sps:$4 sm:$0xff]  }
  0xbb   :  { %812 = vmatpush1.bf16.msra.mxu0 %v2784_v5  ;;  %v2827_v5 = vld [vmem:[%s3954_s9 + $0x34] ss:$8 sps:$4 sm:$0xff]  }
  0xbc   :  { %813 = vmatprep.subr.bf16.mxu0 %v2791_v6  ;;  %v2830_v6 = vld [vmem:[%s3956_s11 + $0x4] ss:$28 sps:$4 sm:$0xff]  }
  0xbf   :  { %814 = vmatpush1.bf16.msra.mxu0 %v2789_v7  ;;  %v2831_v7 = vld [vmem:[%s3956_s11 + $0x10] ss:$28 sps:$4 sm:$0xff]  }
  0xc2   :  { %816 = vmatmul.mubr.bf16.vlgmr.msra.gmra.mrb[0].mxu0 %v94_v8  ;;  %v2833_v8 = vld [vmem:[%s3956_s11 + $0x14] ss:$28 sps:$4 sm:$0xff]  }
  0xc3   :  { %2131 = vmatprep.subr.bf16.mxu0 %v2833_v8  ;;  %v2908_v8 = vld [vmem:[%s3956_s11 + $0x2dc] ss:$28 sps:$4 sm:$0xff]  }
  0xc4   :  { %2132 = vmatpush1.bf16.msra.mxu0 %v2831_v7  ;;  %v2900_v7 = vld [vmem:[%s3956_s11 + $0x2a0] ss:$28 sps:$4 sm:$0xff]  }
  0xc5   :  { %2133 = vmatprep.subr.bf16.mxu0 %v2839_v10  ;;  %v2914_v10 = vld [vmem:[%s3956_s11 + $0x314] ss:$28 sps:$4 sm:$0xff]  }
  0xc8   :  { %2134 = vmatpush1.bf16.msra.mxu0 %v2837_v9  ;;  %v2906_v9 = vld [vmem:[%s3956_s11 + $0x2d8] ss:$28 sps:$4 sm:$0xff]  }
  0xc9   :  { %2135 = vmatprep.subr.bf16.mxu0 %v2845_v12  ;;  %v2917_v12 = vld [vmem:[%s3956_s11 + $0x324] ss:$28 sps:$4 sm:$0xff]  }
  0xcc   :  { %2136 = vmatpush1.bf16.msra.mxu0 %v2843_v11  ;;  %v2912_v11 = vld [vmem:[%s3956_s11 + $0x310] ss:$28 sps:$4 sm:$0xff]  }
  0xcd   :  { %2137 = vmatprep.subr.bf16.mxu0 %v2851_v15  ;;  %v2920_v15 = vld [vmem:[%s3956_s11 + $0x34c] ss:$28 sps:$4 sm:$0xff]  }
  0xe8   :  { %v858_v14 = vpop.f32.mrb[0].mxu1 }
  0xe9   :  { %v860_v17 = vpop.f32.mrb[1].mxu1 }
  0xea   :  { %v862_v18 = vpop.f32.mrb[2].mxu1 }
  0xeb   :  { %v863_v19 = vpop.f32.mrb[3].mxu1  ;;  %v2857_v18 = vld [vmem:[%s3956_s11 + $0xf4] ss:$28 sps:$4 sm:$0xff]  }
  0xec   :  { %v2861_v19 = vld [vmem:[%s3956_s11 + $0x128] ss:$28 sps:$4 sm:$0xff]  }
 0x195   :  { %v817_v26 = vpop.f32.mrb[0].mxu0 }
 0x196   :  { %v2628_v27 = vadd.f32 %v817_v26, %v200_v24  ;;  %v819_v28 = vpop.f32.mrb[1].mxu0  ;;  %v2869_v24 = vld [vmem:[%s3956_s11 + $0x164] ss:$28 sps:$4 sm:$0xff]   ;;  %v2875_v26 = vld [vmem:[%s3956_s11 + $0x19c] ss:$28 sps:$4 sm:$0xff]  }
 0x197   :  { %v2630_v29 = vadd.f32 %v819_v28, %v204_v25  ;;  %v821_v30 = vpop.f32.mrb[2].mxu0  ;;  %v2873_v25 = vld [vmem:[%s3956_s11 + $0x198] ss:$28 sps:$4 sm:$0xff]  }
 0x198   :  { %v2629_v31 = vadd.f32 %v2628_v27, %v858_v14  ;;  %v822_v32 = vpop.f32.mrb[3].mxu0  ;;  %v2849_v14 = vld [vmem:[%s3956_s11 + $0xb8] ss:$28 sps:$4 sm:$0xff]   ;;  %v2879_v27 = vld [vmem:[%s3956_s11 + $0x1d0] ss:$28 sps:$4 sm:$0xff]  }
 0x199   :  { %v2631_v33 = vadd.f32 %v2630_v29, %v860_v17  ;;  %2138 = vmatpush1.bf16.msra.mxu0 %v2849_v14  ;;  %v2855_v17 = vld [vmem:[%s3956_s11 + $0xf0] ss:$28 sps:$4 sm:$0xff]   ;;  %v2885_v29 = vld [vmem:[%s3956_s11 + $0x208] ss:$28 sps:$4 sm:$0xff]   ;;  %v2915_v14 = vld [vmem:[%s3956_s11 + $0x320] ss:$28 sps:$4 sm:$0xff]  }
 0x19a   :  { %v865_v34 = vmax.f32 %v2629_v31, 0.0  ;;  %2139 = vmatprep.subr.bf16.mxu0 %v2857_v18  ;;  %v2881_v28 = vld [vmem:[%s3956_s11 + $0x1d4] ss:$28 sps:$4 sm:$0xff]   ;;  %v2887_v30 = vld [vmem:[%s3956_s11 + $0x20c] ss:$28 sps:$4 sm:$0xff]  }
 0x19b   :  { %v866_v35 = vmax.f32 %v2631_v33, 0.0  ;;  %v2891_v31 = vld [vmem:[%s3956_s11 + $0x240] ss:$28 sps:$4 sm:$0xff]   ;;  %v2897_v33 = vld [vmem:[%s3956_s11 + $0x278] ss:$28 sps:$4 sm:$0xff]  }
 0x19c   :  { %v867_v38 = vpack.c.bf16 %v865_v34, %v865_v34  ;;  %v2893_v32 = vld [vmem:[%s3956_s11 + $0x244] ss:$28 sps:$4 sm:$0xff]   ;;  %v2899_v34 = vld [vmem:[%s3956_s11 + $0x27c] ss:$28 sps:$4 sm:$0xff]  }
 0x19d   :  { %v868_v36 = vpack.c.bf16 %v866_v35, %v866_v35  ;;  %2140 = vmatpush1.bf16.msra.mxu0 %v2855_v17  ;;  %v2903_v35 = vld [vmem:[%s3956_s11 + $0x2b0] ss:$28 sps:$4 sm:$0xff]   ;;  %v2918_v17 = vld [vmem:[%s3956_s11 + $0x348] ss:$28 sps:$4 sm:$0xff]   ;;  %v2923_v18 = vld [vmem:[%s3956_s11 + $0x35c] ss:$28 sps:$4 sm:$0xff]  }
 0x19f   :  { %1036 = vmatprep.mubr.bf16.mxu1 %v868_v36  ;;  %v2905_v36 = vld [vmem:[%s3956_s11 + $0x2b4] ss:$28 sps:$4 sm:$0xff]  }
 0x1a0   :  { %1037 = vmatmul.mubr.bf16.vlgmr.msra.gmra.mrb[4].mxu1 %v867_v38  ;;  %v2911_v38 = vld [vmem:[%s3956_s11 + $0x2ec] ss:$28 sps:$4 sm:$0xff]  }
 0x1a1   :  { %2609 = vmatpush3.bf16.msra.mxu1 %v2810_v37  ;;  %2616 = vmatprep.mubr.msk.bf16.mxu1 %vm3043_vm1, %v3042_v20  ;;  %v2909_v37 = vld [vmem:[%s3956_s11 + $0x2e8] ss:$28 sps:$4 sm:$0xff]  }
 0x1a2   :  { %2610 = vmatprep.subr.bf16.mxu1 %v3042_v20 }
 0x1a5   :  { %2611 = vmatpush3.bf16.msra.mxu1 %v2811_v39  ;;  %v2431_v39 = vld [vmem:[%s3953_s8] ss:$0 sm:$0xff] }
 0x1a6   :  { %2612 = vmatprep.subr.bf16.mxu1 %v3042_v20 }
 0x1a9   :  { %2613 = vmatpush3.bf16.msra.mxu1 %v2812_v40 }
 0x1aa   :  { %2614 = vmatprep.subr.bf16.mxu1 %v3042_v20 }
 0x1ad   :  { %2615 = vmatpush3.bf16.msra.mxu1 %v2813_v42 }
 0x1ae   :  { %2620 = vmatprep.subr.bf16.mxu1 %v3042_v20 }
 0x273   :  { %v2572_v41 = vpop.f32.mrb[4].mxu1 }
 0x274   :  { %v2573_v44 = vpop.f32.mrb[5].mxu1 }
 0x275   :  { %v2574_v45 = vadd.f32 %v2573_v44, %v2572_v41  ;;  %v2575_v46 = vpop.f32.mrb[6].mxu1 }
 0x276   :  { %v2576_v47 = vpop.f32.mrb[7].mxu1  ;;  %v2828_v46 = vld [vmem:[%s3956_s11] ss:$28 sps:$4 sm:$0xff]  }
 0x277   :  { %v1039_v48 = vadd.f32 %v2574_v45, %v2408_v43 }
 0x279   :  { %v1044_v49 = vmax.f32 %v1039_v48, 0.0  ;;  %v2836_v48 = vld [vmem:[%s3956_s11 + $0x3c] ss:$28 sps:$4 sm:$0xff]  }
 0x27b   :  { %v1045_v52 = vpack.c.bf16 %v1044_v49, %v1044_v49  ;;  %v2834_v49 = vld [vmem:[%s3956_s11 + $0x38] ss:$28 sps:$4 sm:$0xff]  }
 0x27d   :  { %2617 = vmatmul.mubr.msk.bf16.vlgmr.msra.gmra.mrb[8].mxu1 %vm1085_vm2, %v1045_v52  ;;  %v2840_v52 = vld [vmem:[%s3956_s11 + $0x70] ss:$28 sps:$4 sm:$0xff]  }
 0x27e   :  { %2621 = vmatpush3.bf16.msra.mxu1 %v2814_v50  ;;  %2624 = vmatprep.mubr.msk.bf16.mxu1 %vm3043_vm1, %v3042_v20  ;;  %v2842_v50 = vld [vmem:[%s3956_s11 + $0x74] ss:$28 sps:$4 sm:$0xff]  }
 0x27f   :  { %2622 = vmatprep.subr.bf16.mxu1 %v3042_v20  ;;  %v2863_v20 = vld [vmem:[%s3956_s11 + $0x12c] ss:$28 sps:$4 sm:$0xff]  }
 0x280   :  { %2141 = vmatprep.subr.bf16.mxu0 %v2863_v20  ;;  %v2926_v20 = vld [vmem:[%s3956_s11 + $0xc] ss:$28 sps:$4 sm:$0xff]  }
 0x281   :  { %2142 = vmatpush1.bf16.msra.mxu0 %v2861_v19  ;;  %v2921_v19 = vld [vmem:[%s3956_s11 + $0x358] ss:$28 sps:$4 sm:$0xff]  }
 0x282   :  { %2623 = vmatpush3.bf16.msra.mxu1 %v1156_v54  ;;  %2143 = vmatprep.subr.bf16.mxu0 %v2869_v24  ;;  %v2846_v54 = vld [vmem:[%s3956_s11 + $0xa8] ss:$28 sps:$4 sm:$0xff]  }
 0x283   :  { %1263 = vmatprep.subr.bf16.mxu1 %v2818_v55  ;;  %v2854_v55 = vld [vmem:[%s3956_s11 + $0xe4] ss:$28 sps:$4 sm:$0xff]  }
 0x285   :  { %2144 = vmatpush1.bf16.msra.mxu0 %v2867_v22  ;;  %v1208_v22 = vld [vmem:[%s3955_s10] sm:$0x3] }
 0x286   :  { %2145 = vmatprep.subr.bf16.mxu0 %v2875_v26  ;;  %v1213_v24 = vrot.slane %v1208_v22, %v3491_v21 }
 0x289   :  { %2146 = vmatpush1.bf16.msra.mxu0 %v2873_v25  ;;  %v1217_v25 = vrot.slane %v1208_v22, %v3497_v23  ;;  %v1456_v22 = vsub.s32 4, %v3142_v13 }
 0x28a   :  { %2147 = vmatprep.subr.bf16.mxu0 %v2881_v28 }
 0x28d   :  { %2148 = vmatpush1.bf16.msra.mxu0 %v2879_v27 }
 0x28e   :  { %2149 = vmatprep.subr.bf16.mxu0 %v2887_v30 }
 0x291   :  { %2150 = vmatpush1.bf16.msra.mxu0 %v2885_v29 }
 0x292   :  { %2151 = vmatprep.subr.bf16.mxu0 %v2893_v32 }
 0x295   :  { %2152 = vmatpush1.bf16.msra.mxu0 %v2891_v31 }
 0x296   :  { %2153 = vmatprep.subr.bf16.mxu0 %v2899_v34 }
 0x299   :  { %2154 = vmatpush1.bf16.msra.mxu0 %v2897_v33 }
 0x29a   :  { %2155 = vmatprep.subr.bf16.mxu0 %v2905_v36 }
 0x29d   :  { %2156 = vmatpush1.bf16.msra.mxu0 %v2903_v35  ;;  %v2924_v35 = vld [vmem:[%s3956_s11 + $0x8] ss:$28 sps:$4 sm:$0xff]  }
 0x29e   :  { %2157 = vmatprep.subr.bf16.mxu0 %v2911_v38  ;;  %v2927_v38 = vld [vmem:[%s3956_s11 + $0x40] ss:$28 sps:$4 sm:$0xff]  }
 0x2a1   :  { %2158 = vmatpush1.bf16.msra.mxu0 %v2909_v37  ;;  %v2929_v37 = vld [vmem:[%s3956_s11 + $0x44] ss:$28 sps:$4 sm:$0xff]  }
 0x2a2   :  { %2159 = vmatprep.subr.bf16.mxu0 %v2917_v12  ;;  %v2981_v12 = vld [vmem:[%s3956_s11 + $0xf8] ss:$28 sps:$4 sm:$0xff]  }
 0x2a5   :  { %2160 = vmatpush1.bf16.msra.mxu0 %v2915_v14  ;;  %v2982_v14 = vld [vmem:[%s3956_s11 + $0x2f0] ss:$28 sps:$4 sm:$0xff]  }
 0x2a6   :  { %2161 = vmatprep.subr.bf16.mxu0 %v2923_v18  ;;  %v2985_v18 = vld [vmem:[%s3956_s11 + $0x168] ss:$28 sps:$4 sm:$0xff]  }
 0x2a9   :  { %2162 = vmatpush1.bf16.msra.mxu0 %v2921_v19  ;;  %v2986_v19 = vld [vmem:[%s3956_s11 + $0x360] ss:$28 sps:$4 sm:$0xff]  }
 0x350   :  { %v1123_v57 = vpop.f32.mrb[8].mxu1 }
 0x351   :  { %v1124_v58 = vadd.f32 %v2425_v56, %v1123_v57  ;;  %v2618_v59 = vpop.f32.mrb[9].mxu1  ;;  %v2852_v56 = vld [vmem:[%s3956_s11 + $0xe0] ss:$28 sps:$4 sm:$0xff]  }
 0x352   :  { %v1126_v60 = vpop.f32.mrb[10].mxu1  ;;  %v2860_v57 = vld [vmem:[%s3956_s11 + $0x11c] ss:$28 sps:$4 sm:$0xff]   ;;  %v2866_v59 = vld [vmem:[%s3956_s11 + $0x154] ss:$28 sps:$4 sm:$0xff]  }
 0x353   :  { %v1129_v61 = vmax.f32 %v1124_v58, 0.0  ;;  %v2619_v62 = vpop.f32.mrb[11].mxu1  ;;  %v2858_v58 = vld [vmem:[%s3956_s11 + $0x118] ss:$28 sps:$4 sm:$0xff]   ;;  %v2864_v60 = vld [vmem:[%s3956_s11 + $0x150] ss:$28 sps:$4 sm:$0xff]  }
 0x354   :  { %v2870_v62 = vld [vmem:[%s3956_s11 + $0x188] ss:$28 sps:$4 sm:$0xff]  }
 0x355   :  { %v1130_v0 = vpack.c.bf16 %v1129_v61, %v1129_v61  ;;  %v2872_v61 = vld [vmem:[%s3956_s11 + $0x18c] ss:$28 sps:$4 sm:$0xff]  }
 0x357   :  { %2625 = vmatmul.mubr.msk.bf16.vlgmr.msra.gmra.mrb[12].mxu1 %vm1150_vm4, %v1130_v0  ;;  %v2876_v0 = vld [vmem:[%s3956_s11 + $0x1c0] ss:$28 sps:$4 sm:$0xff]  }
 0x358   :  { %1264 = vmatpush1.bf16.msra.mxu1 %v2816_v63  ;;  %1295 = vmatprep.mubr.bf16.mxu1 %v3041_v51  ;;  %v2825_v51 = vld [vmem:[%s3954_s9 + $0x30] ss:$8 sps:$4 sm:$0xff]   ;;  %v2878_v63 = vld [vmem:[%s3956_s11 + $0x1c4] ss:$28 sps:$4 sm:$0xff]  }
 0x359   :  { %1265 = vmatprep.subr.bf16.mxu1 %v2821_v1  ;;  %v2884_v1 = vld [vmem:[%s3956_s11 + $0x1fc] ss:$28 sps:$4 sm:$0xff]  }
 0x35c   :  { %1266 = vmatpush1.bf16.msra.mxu1 %v2819_v2  ;;  %v2882_v2 = vld [vmem:[%s3956_s11 + $0x1f8] ss:$28 sps:$4 sm:$0xff]  }
 0x35d   :  { %1267 = vmatprep.subr.bf16.mxu1 %v2824_v3  ;;  %v2890_v3 = vld [vmem:[%s3956_s11 + $0x234] ss:$28 sps:$4 sm:$0xff]  }
 0x360   :  { %1268 = vmatpush1.bf16.msra.mxu1 %v2822_v4  ;;  %v2888_v4 = vld [vmem:[%s3956_s11 + $0x230] ss:$28 sps:$4 sm:$0xff]  }
 0x361   :  { %1269 = vmatprep.subr.bf16.mxu1 %v2827_v5  ;;  %v2896_v5 = vld [vmem:[%s3956_s11 + $0x26c] ss:$28 sps:$4 sm:$0xff]  }
 0x364   :  { %1270 = vmatpush1.bf16.msra.mxu1 %v2825_v51  ;;  %v2894_v51 = vld [vmem:[%s3956_s11 + $0x268] ss:$28 sps:$4 sm:$0xff]  }
 0x365   :  { %2049 = vmatprep.subr.bf16.mxu1 %v2830_v6  ;;  %v2902_v6 = vld [vmem:[%s3956_s11 + $0x2a4] ss:$28 sps:$4 sm:$0xff]  }
 0x42a   :  { %v1192_v40 = vpop.f32.mrb[12].mxu1 }
 0x42b   :  { %v1193_v42 = vadd.f32 %v2431_v39, %v1192_v40  ;;  %v2626_v41 = vpop.f32.mrb[13].mxu1  ;;  %v2932_v39 = vld [vmem:[%s3956_s11 + $0x7c] ss:$28 sps:$4 sm:$0xff]  }
 0x42c   :  { %v1195_v43 = vpop.f32.mrb[14].mxu1  ;;  %v2930_v40 = vld [vmem:[%s3956_s11 + $0x78] ss:$28 sps:$4 sm:$0xff]   ;;  %v2933_v41 = vld [vmem:[%s3956_s11 + $0xb0] ss:$28 sps:$4 sm:$0xff]  }
 0x42d   :  { %v1198_v44 = vmax.f32 %v1193_v42, 0.0  ;;  %v2627_v45 = vpop.f32.mrb[15].mxu1  ;;  %v2935_v42 = vld [vmem:[%s3956_s11 + $0xb4] ss:$28 sps:$4 sm:$0xff]   ;;  %v2938_v43 = vld [vmem:[%s3956_s11 + $0xec] ss:$28 sps:$4 sm:$0xff]  }
 0x42e   :  { %v2941_v45 = vld [vmem:[%s3956_s11 + $0x124] ss:$28 sps:$4 sm:$0xff]  }
 0x42f   :  { %v1199_v47 = vpack.c.bf16 %v1198_v44, %v1198_v44  ;;  %v2936_v44 = vld [vmem:[%s3956_s11 + $0xe8] ss:$28 sps:$4 sm:$0xff]  }
 0x431   :  { %2443 = vmatmul.mubr.msk.bf16.vlgmr.msra.gmra.mrb[16].mxu1 %vm1085_vm2, %v1199_v47  ;;  %v2944_v47 = vld [vmem:[%s3956_s11 + $0x15c] ss:$28 sps:$4 sm:$0xff]  }
 0x432   :  { %2050 = vmatpush1.bf16.msra.mxu1 %v2828_v46  ;;  %v2939_v46 = vld [vmem:[%s3956_s11 + $0x120] ss:$28 sps:$4 sm:$0xff]  }
 0x433   :  { %2051 = vmatprep.subr.bf16.mxu1 %v2836_v48  ;;  %v2942_v48 = vld [vmem:[%s3956_s11 + $0x158] ss:$28 sps:$4 sm:$0xff]  }
 0x436   :  { %2052 = vmatpush1.bf16.msra.mxu1 %v2834_v49  ;;  %v2947_v49 = vld [vmem:[%s3956_s11 + $0x194] ss:$28 sps:$4 sm:$0xff]  }
 0x437   :  { %2053 = vmatprep.subr.bf16.mxu1 %v2842_v50  ;;  %v2945_v50 = vld [vmem:[%s3956_s11 + $0x190] ss:$28 sps:$4 sm:$0xff]  }
 0x43a   :  { %2054 = vmatpush1.bf16.msra.mxu1 %v2840_v52  ;;  %v2950_v52 = vld [vmem:[%s3956_s11 + $0x1cc] ss:$28 sps:$4 sm:$0xff]  }
 0x43b   :  { %2055 = vmatprep.subr.bf16.mxu1 %v2848_v53  ;;  %v2948_v53 = vld [vmem:[%s3956_s11 + $0x1c8] ss:$28 sps:$4 sm:$0xff]  }
 0x43e   :  { %2056 = vmatpush1.bf16.msra.mxu1 %v2846_v54  ;;  %v2953_v54 = vld [vmem:[%s3956_s11 + $0x204] ss:$28 sps:$4 sm:$0xff]  }
 0x43f   :  { %2057 = vmatprep.subr.bf16.mxu1 %v2854_v55  ;;  %v2951_v55 = vld [vmem:[%s3956_s11 + $0x200] ss:$28 sps:$4 sm:$0xff]  }
 0x442   :  { %2058 = vmatpush1.bf16.msra.mxu1 %v2852_v56  ;;  %v2956_v56 = vld [vmem:[%s3956_s11 + $0x23c] ss:$28 sps:$4 sm:$0xff]  }
 0x443   :  { %2059 = vmatprep.subr.bf16.mxu1 %v2860_v57  ;;  %v2954_v57 = vld [vmem:[%s3956_s11 + $0x238] ss:$28 sps:$4 sm:$0xff]  }
 0x446   :  { %2060 = vmatpush1.bf16.msra.mxu1 %v2858_v58  ;;  %v2959_v58 = vld [vmem:[%s3956_s11 + $0x274] ss:$28 sps:$4 sm:$0xff]  }
 0x447   :  { %2061 = vmatprep.subr.bf16.mxu1 %v2866_v59  ;;  %v2957_v59 = vld [vmem:[%s3956_s11 + $0x270] ss:$28 sps:$4 sm:$0xff]  }
 0x44a   :  { %2062 = vmatpush1.bf16.msra.mxu1 %v2864_v60  ;;  %v2962_v60 = vld [vmem:[%s3956_s11 + $0x2ac] ss:$28 sps:$4 sm:$0xff]  }
 0x44b   :  { %2063 = vmatprep.subr.bf16.mxu1 %v2872_v61  ;;  %v2960_v61 = vld [vmem:[%s3956_s11 + $0x2a8] ss:$28 sps:$4 sm:$0xff]  }
 0x44e   :  { %2064 = vmatpush1.bf16.msra.mxu1 %v2870_v62  ;;  %v2965_v62 = vld [vmem:[%s3956_s11 + $0x2e4] ss:$28 sps:$4 sm:$0xff]  }
 0x44f   :  { %2065 = vmatprep.subr.bf16.mxu1 %v2878_v63  ;;  %v2963_v63 = vld [vmem:[%s3956_s11 + $0x2e0] ss:$28 sps:$4 sm:$0xff]  }
 0x452   :  { %2066 = vmatpush1.bf16.msra.mxu1 %v2876_v0  ;;  %v2968_v0 = vld [vmem:[%s3956_s11 + $0x31c] ss:$28 sps:$4 sm:$0xff]  }
 0x453   :  { %2067 = vmatprep.subr.bf16.mxu1 %v2884_v1  ;;  %v2966_v1 = vld [vmem:[%s3956_s11 + $0x318] ss:$28 sps:$4 sm:$0xff]  }
 0x456   :  { %2068 = vmatpush1.bf16.msra.mxu1 %v2882_v2  ;;  %v2971_v2 = vld [vmem:[%s3956_s11 + $0x354] ss:$28 sps:$4 sm:$0xff]  }
 0x457   :  { %2069 = vmatprep.subr.bf16.mxu1 %v2890_v3  ;;  %v2969_v3 = vld [vmem:[%s3956_s11 + $0x350] ss:$28 sps:$4 sm:$0xff]  }
 0x45a   :  { %2070 = vmatpush1.bf16.msra.mxu1 %v2888_v4  ;;  %v2972_v4 = vld [vmem:[%s3956_s11 + $0x1d8] ss:$28 sps:$4 sm:$0xff]  }
 0x45b   :  { %2071 = vmatprep.subr.bf16.mxu1 %v2896_v5  ;;  %v2973_v5 = vld [vmem:[%s3956_s11 + $0x18] ss:$28 sps:$4 sm:$0xff]  }
 0x45e   :  { %2072 = vmatpush1.bf16.msra.mxu1 %v2894_v51  ;;  %v2974_v51 = vld [vmem:[%s3956_s11 + $0x210] ss:$28 sps:$4 sm:$0xff]  }
 0x45f   :  { %2073 = vmatprep.subr.bf16.mxu1 %v2902_v6  ;;  %v2975_v6 = vld [vmem:[%s3956_s11 + $0x50] ss:$28 sps:$4 sm:$0xff]  }
 0x462   :  { %2074 = vmatpush1.bf16.msra.mxu1 %v2900_v7  ;;  %v2976_v7 = vld [vmem:[%s3956_s11 + $0x248] ss:$28 sps:$4 sm:$0xff]  }
 0x463   :  { %2075 = vmatprep.subr.bf16.mxu1 %v2908_v8  ;;  %v2977_v8 = vld [vmem:[%s3956_s11 + $0x88] ss:$28 sps:$4 sm:$0xff]  }
 0x466   :  { %2076 = vmatpush1.bf16.msra.mxu1 %v2906_v9  ;;  %v2978_v9 = vld [vmem:[%s3956_s11 + $0x280] ss:$28 sps:$4 sm:$0xff]  }
 0x467   :  { %2077 = vmatprep.subr.bf16.mxu1 %v2914_v10  ;;  %v2979_v10 = vld [vmem:[%s3956_s11 + $0xc0] ss:$28 sps:$4 sm:$0xff]  }
 0x46a   :  { %2078 = vmatpush1.bf16.msra.mxu1 %v2912_v11  ;;  %v2980_v11 = vld [vmem:[%s3956_s11 + $0x2b8] ss:$28 sps:$4 sm:$0xff]  }
 0x46b   :  { %2079 = vmatprep.subr.bf16.mxu1 %v2920_v15  ;;  %v2983_v15 = vld [vmem:[%s3956_s11 + $0x130] ss:$28 sps:$4 sm:$0xff]  }
 0x46e   :  { %2080 = vmatpush1.bf16.msra.mxu1 %v2918_v17  ;;  %v2984_v17 = vld [vmem:[%s3956_s11 + $0x328] ss:$28 sps:$4 sm:$0xff]  }
 0x46f   :  { %2090 = vmatprep.subr.bf16.mxu1 %v2926_v20  ;;  %v2987_v20 = vld [vmem:[%s3956_s11 + $0x1a0] ss:$28 sps:$4 sm:$0xff]   ;;  %s3044_s11 = smov [#allocation2]  }
 0x504   :  { %v1297_v26 = vpop.f32.mrb[16].mxu1 }
 0x505   :  { %v1298_v27 = vadd.f32 %v1297_v26, %v1213_v24  ;;  %v1299_v28 = vpop.f32.mrb[17].mxu1  ;;  %v3913_v24 = vld [vmem:[%s3957_s12] sm:$0x7f]  ;;  %s2301_s12 = sshll.u32 %s3044_s11, 4  ;;  %s2302_s12 = int_to_ptr.vmem [resolvable:$true] %s2301_s12 }
 0x506   :  { %v1300_v29 = vadd.f32 %v1299_v28, %v1217_v25  ;;  %v1301_v30 = vpop.f32.mrb[18].mxu1  ;;  %v1460_v25 = vsub.s32 5, %v3142_v13  ;;  %v1441_v26 = vrot.slane %v3913_v24, %v3491_v21  ;;  %v1445_v28 = vrot.slane %v3913_v24, %v3497_v23  ;;  %s3016_s7 = scalar_lea.vmem %s2302_s12, 224  ;;  %p3021_p1 = scmp.lt.s32.totalorder %s2302_s12, %s2302_s12 }
 0x507   :  { %v1304_v31 = vmax.f32 %v1298_v27, 0.0  ;;  %v1302_v32 = vpop.f32.mrb[19].mxu1  ;;  %v1457_v27 = vrot.slane %v3913_v24, %v1456_v22  ;;  %p3017_p0 = scmp.ne.s32.totalorder %s2302_s12, %s3016_s7  ;;  %p3022_p2 = scmp.lt.s32.totalorder %s3016_s7, %s3016_s7 }
 0x508   :  { %v1305_v33 = vmax.f32 %v1300_v29, 0.0  ;;  %v1461_v29 = vrot.slane %v3913_v24, %v1460_v25 }
 0x509   :  { %v3761_v36 = vpack.c.bf16 %v1304_v31, %v1304_v31  ;;  %p3023_p3 = por %p3022_p2, %p3021_p1 }
 0x50a   :  { %v3756_v34 = vpack.c.bf16 %v1305_v33, %v1305_v33 }
 0x50b   :  { %p3024_p4 = pnand %p3023_p3, %p3017_p0 }
 0x50c   :  { %2081 = vmatprep.mubr.bf16.mxu1 %v3756_v34  ;;  %2163 = vmatprep.mubr.bf16.mxu0 %v3756_v34 }
 0x50d   :  { %2082 = vmatmul.mubr.bf16.vlgmr.msra.gmra.mrb[20].mxu1 %v3761_v36  ;;  %2164 = vmatmul.mubr.bf16.vlgmr.msra.gmra.mrb[4].mxu0 %v3761_v36 }
 0x50e   :  { %2091 = vmatpush1.bf16.msra.mxu1 %v2924_v35  ;;  %2122 = vmatprep.mubr.bf16.mxu1 %v3756_v34 }
 0x50f   :  { %2092 = vmatprep.subr.bf16.mxu1 %v2929_v37 }
 0x512   :  { %2093 = vmatpush1.bf16.msra.mxu1 %v2927_v38 }
 0x513   :  { %2094 = vmatprep.subr.bf16.mxu1 %v2932_v39 }
 0x516   :  { %2095 = vmatpush1.bf16.msra.mxu1 %v2930_v40 }
 0x517   :  { %2096 = vmatprep.subr.bf16.mxu1 %v2935_v42 }
 0x51a   :  { %2097 = vmatpush1.bf16.msra.mxu1 %v2933_v41 }
 0x51b   :  { %2098 = vmatprep.subr.bf16.mxu1 %v2938_v43 }
 0x51e   :  { %2099 = vmatpush1.bf16.msra.mxu1 %v2936_v44 }
 0x51f   :  { %2100 = vmatprep.subr.bf16.mxu1 %v2941_v45 }
 0x522   :  { %2101 = vmatpush1.bf16.msra.mxu1 %v2939_v46 }
 0x523   :  { %2102 = vmatprep.subr.bf16.mxu1 %v2944_v47 }
 0x526   :  { %2103 = vmatpush1.bf16.msra.mxu1 %v2942_v48 }
 0x527   :  { %2104 = vmatprep.subr.bf16.mxu1 %v2947_v49 }
 0x52a   :  { %2105 = vmatpush1.bf16.msra.mxu1 %v2945_v50 }
 0x52b   :  { %2106 = vmatprep.subr.bf16.mxu1 %v2950_v52 }
 0x52e   :  { %2107 = vmatpush1.bf16.msra.mxu1 %v2948_v53 }
 0x52f   :  { %2108 = vmatprep.subr.bf16.mxu1 %v2953_v54 }
 0x532   :  { %2109 = vmatpush1.bf16.msra.mxu1 %v2951_v55 }
 0x533   :  { %2110 = vmatprep.subr.bf16.mxu1 %v2956_v56 }
 0x536   :  { %2111 = vmatpush1.bf16.msra.mxu1 %v2954_v57 }
 0x537   :  { %2112 = vmatprep.subr.bf16.mxu1 %v2959_v58 }
 0x53a   :  { %2113 = vmatpush1.bf16.msra.mxu1 %v2957_v59 }
 0x53b   :  { %2114 = vmatprep.subr.bf16.mxu1 %v2962_v60 }
 0x53e   :  { %2115 = vmatpush1.bf16.msra.mxu1 %v2960_v61 }
 0x53f   :  { %2116 = vmatprep.subr.bf16.mxu1 %v2965_v62 }
 0x542   :  { %2117 = vmatpush1.bf16.msra.mxu1 %v2963_v63  ;;  %v1448_v63 = vsub.s32 2, %v3142_v13 }
 0x543   :  { %2118 = vmatprep.subr.bf16.mxu1 %v2968_v0  ;;  %v1452_v0 = vsub.s32 3, %v3142_v13 }
 0x546   :  { %2119 = vmatpush1.bf16.msra.mxu1 %v2966_v1  ;;  %v1449_v1 = vrot.slane %v3913_v24, %v1448_v63 }
 0x547   :  { %2120 = vmatprep.subr.bf16.mxu1 %v2971_v2  ;;  %v1453_v2 = vrot.slane %v3913_v24, %v1452_v0 }
 0x54a   :  { %2121 = vmatpush1.bf16.msra.mxu1 %v2969_v3 }
 0x54b   :  { %2586 = vmatprep.subr.bf16.mxu1 %v2972_v4 }
 0x54d   :  { %2123 = vmatmul.mubr.bf16.vlgmr.msra.gmra.mrb[24].mxu1 %v3761_v36 }
 0x54e   :  { %2587 = vmatpush3.bf16.msra.mxu1 %v2973_v5  ;;  %2204 = vmatprep.mubr.bf16.mxu1 %v3756_v34 }
 0x54f   :  { %2588 = vmatprep.subr.bf16.mxu1 %v2974_v51 }
 0x552   :  { %2589 = vmatpush3.bf16.msra.mxu1 %v2975_v6 }
 0x553   :  { %2590 = vmatprep.subr.bf16.mxu1 %v2976_v7 }
 0x556   :  { %2591 = vmatpush3.bf16.msra.mxu1 %v2977_v8 }
 0x557   :  { %2592 = vmatprep.subr.bf16.mxu1 %v2978_v9 }
 0x55a   :  { %2593 = vmatpush3.bf16.msra.mxu1 %v2979_v10 }
 0x55b   :  { %2594 = vmatprep.subr.bf16.mxu1 %v2980_v11 }
 0x55e   :  { %2595 = vmatpush3.bf16.msra.mxu1 %v2981_v12 }
 0x55f   :  { %2596 = vmatprep.subr.bf16.mxu1 %v2982_v14 }
 0x562   :  { %2597 = vmatpush3.bf16.msra.mxu1 %v2983_v15 }
 0x563   :  { %2598 = vmatprep.subr.bf16.mxu1 %v2984_v17 }
 0x566   :  { %2599 = vmatpush3.bf16.msra.mxu1 %v2985_v18  ;;  %v1464_v18 = vsub.s32 6, %v3142_v13 }
 0x567   :  { %2600 = vmatprep.subr.bf16.mxu1 %v2986_v19 }
 0x568   :  { %v1465_v25 = vrot.slane %v3913_v24, %v1464_v18 }
 0x56a   :  { %2601 = vmatpush3.bf16.msra.mxu1 %v2987_v20 }
 0x56d   :  { %2205 = vmatmul.mubr.bf16.vlgmr.msra.gmra.mrb[28].mxu1 %v3761_v36 }
 0x5e0   :  { %v2083_v30 = vpop.f32.mrb[20].mxu1  ;;  %v2165_v31 = vpop.f32.mrb[4].mxu0 }
 0x5e1   :  { %v2084_v32 = vadd.f32 %v2083_v30, %v1441_v26  ;;  %v2166_v33 = vadd.f32 %v2165_v31, %v1457_v27  ;;  %v2085_v34 = vpop.f32.mrb[21].mxu1  ;;  %v2167_v35 = vpop.f32.mrb[5].mxu0 }
 0x5e2   :  { %v2086_v36 = vadd.f32 %v2085_v34, %v1445_v28  ;;  %v2168_v37 = vadd.f32 %v2167_v35, %v1461_v29  ;;  %v2087_v38 = vpop.f32.mrb[22].mxu1  ;;  %v2169_v39 = vpop.f32.mrb[6].mxu0 }
 0x5e3   :  { %v2212_v40 = vsub.f32 0.0, %v2084_v32  ;;  %v2216_v42 = vsub.f32 0.0, %v2166_v33  ;;  %v2088_v21 = vpop.f32.mrb[23].mxu1  ;;  %v2170_v41 = vpop.f32.mrb[7].mxu0 }
 0x5e4   :  { %v2213_v43 = vsub.f32 0.0, %v2086_v36  ;;  %v2217_v44 = vsub.f32 0.0, %v2168_v37 }
 0x5e5   :  { %v2219_v45 = vmul.f32 1.442695, %v2212_v40  ;;  %v2227_v23 = vmul.f32 1.442695, %v2216_v42 }
 0x5e6   :  { %v2221_v46 = vmul.f32 1.442695, %v2213_v43  ;;  %v2229_v47 = vmul.f32 1.442695, %v2217_v44 }
 0x5e7   :  { %2988 = vpow2.f32 %v2219_v45 }
 0x5e8   :  { %2990 = vpow2.f32 %v2227_v23 }
 0x5e9   :  { %2992 = vpow2.f32 %v2221_v46 }
 0x5ea   :  { %2994 = vpow2.f32 %v2229_v47 }
 0x5f1   :  { %v2989_v48 = vpop.eup %2988 }
 0x5f2   :  { %v2991_v49 = vpop.eup %2990  ;;  %v2233_v50 = vadd.f32 1.0, %v2989_v48 }
 0x5f3   :  { %v2993_v52 = vpop.eup %2992  ;;  %v2237_v53 = vadd.f32 1.0, %v2991_v49 }
 0x5f4   :  { %v2995_v54 = vpop.eup %2994  ;;  %2996 = vrcp.f32 %v2233_v50  ;;  %v2234_v55 = vadd.f32 1.0, %v2993_v52 }
 0x5f5   :  { %2998 = vrcp.f32 %v2237_v53  ;;  %v2238_v56 = vadd.f32 1.0, %v2995_v54 }
 0x5f6   :  { %3000 = vrcp.f32 %v2234_v55 }
 0x5f7   :  { %3002 = vrcp.f32 %v2238_v56 }
 0x5fe   :  { %v2997_v57 = vpop.eup %2996 }
 0x5ff   :  { %v2999_v58 = vpop.eup %2998 }
 0x600   :  { %v3001_v59 = vpop.eup %3000 }
 0x601   :  { %v3003_v60 = vpop.eup %3002  ;;  %v2254_v61 = vcombine.low %v2997_v57, %v3001_v59 }
 0x602   :  { %v2271_v62 = vcombine.low %v2999_v58, %v3003_v60 }
 0x603   :  { %v2262_v30 = vrot.slane %v2254_v61, %v3151_v16 }
 0x604   :  { %v2278_v38 = vrot.slane %v2271_v62, %v3151_v16 }
 0x620   :  { %v2124_v3 = vpop.f32.mrb[24].mxu1 }
 0x621   :  { %v2125_v4 = vadd.f32 %v2124_v3, %v1449_v1  ;;  %v2126_v5 = vpop.f32.mrb[25].mxu1 }
 0x622   :  { %v2127_v51 = vadd.f32 %v2126_v5, %v1453_v2  ;;  %v2128_v6 = vpop.f32.mrb[26].mxu1 }
 0x623   :  { %v2214_v7 = vsub.f32 0.0, %v2125_v4  ;;  %v2129_v8 = vpop.f32.mrb[27].mxu1 }
 0x624   :  { %v2215_v9 = vsub.f32 0.0, %v2127_v51 }
 0x625   :  { %v2223_v10 = vmul.f32 1.442695, %v2214_v7 }
 0x626   :  { %v2225_v11 = vmul.f32 1.442695, %v2215_v9 }
 0x627   :  { %3004 = vpow2.f32 %v2223_v10 }
 0x628   :  { %3006 = vpow2.f32 %v2225_v11 }
 0x631   :  { %v3005_v12 = vpop.eup %3004 }
 0x632   :  { %v3007_v14 = vpop.eup %3006  ;;  %v2235_v15 = vadd.f32 1.0, %v3005_v12 }
 0x633   :  { %v2236_v17 = vadd.f32 1.0, %v3007_v14 }
 0x634   :  { %3008 = vrcp.f32 %v2235_v15 }
 0x635   :  { %3010 = vrcp.f32 %v2236_v17 }
 0x63e   :  { %v3009_v19 = vpop.eup %3008 }
 0x63f   :  { %v3011_v20 = vpop.eup %3010 }
 0x640   :  { %v2602_v22 = vpop.f32.mrb[28].mxu1  ;;  %v2255_v26 = vcombine.low %v3009_v19, %v3011_v20 }
 0x641   :  { %v2603_v27 = vpop.f32.mrb[29].mxu1 }
 0x642   :  { %v2604_v28 = vadd.f32 %v2603_v27, %v2602_v22  ;;  %v2605_v29 = vpop.f32.mrb[30].mxu1  ;;  %v2269_v31 = vrot.slane %v2255_v26, %v3151_v16 }
 0x643   :  { %v2606_v32 = vpop.f32.mrb[31].mxu1 }
 0x644   :  { %v2207_v33 = vadd.f32 %v2604_v28, %v1465_v25  ;;  %v2270_v34 = vcombine.low %v2262_v30, %v2269_v31 }
 0x646   :  { %v2218_v35 = vsub.f32 0.0, %v2207_v33  ;;  %2289 = vst [vmem:[#allocation2] sm:$0xff] %v2270_v34 }
 0x648   :  { %v2231_v36 = vmul.f32 1.442695, %v2218_v35 }
 0x64a   :  { %3012 = vpow2.f32 %v2231_v36 }
 0x654   :  { %v3013_v13 = vpop.eup %3012 }
 0x655   :  { %v2239_v37 = vadd.f32 1.0, %v3013_v13 }
 0x657   :  { %3014 = vrcp.f32 %v2239_v37 }
 0x661   :  { %v3015_v24 = vpop.eup %3014 }
 0x662   :  { %v2285_v39 = vrot.slane %v3015_v24, %v3151_v16 }
 0x664   :  { %v2286_v40 = vcombine.low %v2278_v38, %v2285_v39 }
 0x666   :  { %2294 = vst.msk [vmem:[#allocation2 + $0x8] sm:$0x3f] %vm2293_vm8, %v2286_v40 }
 0x667   :  { %3027 = shalt.err (!%p3024_p4)
}
 0x668   :  { %s3028_s24 = scalar_lea.hbm %s3958_s13, 224 }
 0x669   :  { %p3029_p5 = scmp.ne.s32.totalorder %s3958_s13, %s3028_s24  ;;  %p3032_p6 = scmp.lt.u32.totalorder %s3028_s24, %s3958_s13 }
 0x66b   :  { %p3034_p7 = pnand %p3032_p6, %p3029_p5 }
 0x66d   :  { %3037 = shalt.err (!%p3034_p7)
}
 0x66e   :  { %2304 = dma.vmem_to_hbm [thread:$0]  %s2302_s12, 224, %s3958_s13, [#allocation3]  }
 0x66f   :  { %3038 = dma.done.wait [#allocation3], 224  }
 0x670   :  { %3039 = vsyncadd [#allocation3], 4294967072 }
 0x671   :  { %2308 = vsyncpa [#allocation3], 1 }

</bundles_post_ra>
